<compile_context>
chip_gen: v7x
topology: tpu7x:2x2x1
jax: 0.10.0
libtpu: 0.0.40
codegen_flags: <defaults>
</compile_context>

<pallas_src>
import math

import jax
import jax.numpy as jnp
import numpy as np
from jax import lax
from jax.experimental import pallas as pl
from jax.experimental.pallas import tpu as pltpu


# ---------------------------------------------------------------------------
# Pallas kernel
# ---------------------------------------------------------------------------
def gru_model_kernel(x_ref,
                     w_ih1_ref, b_gi1_ref, w_hh1_ref, b_hn1_ref,
                     w_abbb_ref, b_abbb_ref, w_albe_ref, b_albe_ref,
                     w_ih2x_ref, w_ih2ab_ref, b_gi2_ref, w_hh2_ref, b_hn2_ref,
                     w_act_ref, b_act_ref,
                     abbb_ref, albe_ref, act_ref,
                     gi_scr, h_all_scr, h1_carry, h2_carry):
    """One grid step = one (batch block, time chunk): rows = tc * Bb."""
    Bb, H = h1_carry.shape
    rows = h_all_scr.shape[0]
    tc = rows // Bb

    # Reset the cross-chunk hidden-state carries at the start of each sequence
    # (time-chunk index 0; the batch-block axis is the outer/parallel one).
    @pl.when(pl.program_id(1) == 0)
    def _():
        h1_carry[...] = jnp.zeros_like(h1_carry)
        h2_carry[...] = jnp.zeros_like(h2_carry)

    x_flat = x_ref[...]                                        # (tc*Bb, I)

    # ---- Phase 0: batched input->hidden pre-activations, GRU#1 -------------
    # Single (I, 3H) matmul; b_ih1 + b_h{r,z}1 already folded into b_gi1.
    gi_scr[...] = (jnp.dot(x_flat, w_ih1_ref[...],
                           preferred_element_type=jnp.float32)
                   + b_gi1_ref[...])

    def run_recurrence(w_hh_ref, b_hn_ref, h_carry):
        """Serial part: a single h @ W_hh (H,3H) dot per step."""
        w_hh = w_hh_ref[...]                                   # hoisted (H, 3H)
        b_hn = jnp.broadcast_to(b_hn_ref[...], (Bb, H))        # hoisted broadcast

        def step(t, h):
            row = pl.multiple_of(t * Bb, 8)
            gh = jnp.dot(h, w_hh, preferred_element_type=jnp.float32)  # (Bb,3H)
            gi = gi_scr[pl.ds(row, Bb), :]                             # (Bb,3H)
            rz = jax.nn.sigmoid(gi[:, :2 * H] + gh[:, :2 * H])
            r = rz[:, :H]
            z = rz[:, H:]
            n = jnp.tanh(gi[:, 2 * H:] + r * (gh[:, 2 * H:] + b_hn))
            h_new = (1.0 - z) * n + z * h
            h_all_scr[pl.ds(row, Bb), :] = h_new               # only vst in loop
            return h_new

        h_carry[...] = lax.fori_loop(0, tc, step, h_carry[...], unroll=8)

    # ---- Phase 1: GRU#1 recurrence ------------------------------------------
    run_recurrence(w_hh1_ref, b_hn1_ref, h1_carry)

    # ---- Phase 2: batched heads (stored early) + GRU#2 gi precompute --------
    h1_flat = h_all_scr[...]                                   # (tc*Bb, H)
    abbb = jnp.maximum(
        jnp.dot(h1_flat, w_abbb_ref[...],
                preferred_element_type=jnp.float32) + b_abbb_ref[...], 0.0)
    abbb_ref[...] = abbb
    albe_ref[...] = (jnp.dot(abbb, w_albe_ref[...],
                             preferred_element_type=jnp.float32)
                     + b_albe_ref[...])
    # gi_scr reuse is safe: Phase 1 fully consumed it before this overwrite.
    gi_scr[...] = (jnp.dot(x_flat, w_ih2x_ref[...],
                           preferred_element_type=jnp.float32)
                   + jnp.dot(abbb, w_ih2ab_ref[...],
                             preferred_element_type=jnp.float32)
                   + b_gi2_ref[...])

    # ---- Phase 3: GRU#2 recurrence (h_all_scr reused for h2) ----------------
    run_recurrence(w_hh2_ref, b_hn2_ref, h2_carry)

    # ---- Phase 4: batched action head + softmax ------------------------------
    h2_flat = h_all_scr[...]
    logits = (jnp.dot(h2_flat, w_act_ref[...],
                      preferred_element_type=jnp.float32) + b_act_ref[...])
    act_ref[...] = jax.nn.softmax(logits, axis=-1)


# ---------------------------------------------------------------------------
# Wrapper
# ---------------------------------------------------------------------------
def _round_up(x, m):
    return ((x + m - 1) // m) * m


def _full_spec(arr):
    zeros = (0,) * arr.ndim
    return pl.BlockSpec(arr.shape, lambda *_: zeros)


def gru_forward(X, params, *, batch_blocks=1):
    """X: (B, T, ninputs) float32, batch_first (PyTorch convention).

    batch_blocks: number of sublane-aligned batch blocks put on a leading
    "parallel" grid axis (set to 2 on v7x to use both TensorCores; leave at 1
    on single-TensorCore chips so the serial recurrence sees one big M block).
    """
    B, T, I = X.shape
    H = params["w_hh1"].shape[0]
    A = params["w_ab"].shape[1]
    Bn = params["w_bb"].shape[1]
    NA = params["w_act"].shape[1]
    F = A + Bn + 2 + NA

    nb = max(1, int(batch_blocks))
    Bp = _round_up(B, 8 * nb)                 # sublane-aligned padded batch
    Bb = Bp // nb                             # rows per batch block (mult of 8)

    # Timesteps per grid chunk from a conservative VMEM budget:
    #   scratch (gi 3H + h_all H) + 2x double-buffered input + 2x output blocks.
    bytes_per_step = Bb * 4 * (3 * H + H + 2 * I + 2 * F)
    tc_cap = max(8, (16 * 1024 * 1024 // bytes_per_step) // 8 * 8)
    tc = min(_round_up(T, 8), tc_cap)
    T_pad = _round_up(T, tc)
    n_chunks = T_pad // tc

    f32 = jnp.float32

    # (B,T,I) -> pad -> (nb, T_pad, Bb, I) -> flat (nb*T_pad*Bb, I) rows where
    # row = b_block*(T_pad*Bb) + t*Bb + r  (so one chunk is a contiguous slab).
    xp = jnp.pad(X.astype(f32), ((0, Bp - B), (0, T_pad - T), (0, 0)))
    x_flat = jnp.transpose(xp.reshape(nb, Bb, T_pad, I),
                           (0, 2, 1, 3)).reshape(nb * T_pad * Bb, I)

    def gi_bias(b_ih, b_hh):                  # fold b_ih + b_h{r,z} (not b_hn)
        b = b_ih + jnp.concatenate([b_hh[:2 * H], jnp.zeros((H,), f32)])
        return b.astype(f32).reshape(1, 3 * H)

    w_ih1 = params["w_ih1"].astype(f32)                       # (I, 3H) [r|z|n]
    w_hh1 = params["w_hh1"].astype(f32)                       # (H, 3H)
    b_gi1 = gi_bias(params["b_ih1"], params["b_hh1"])
    b_hn1 = params["b_hh1"][2 * H:].astype(f32).reshape(1, H)

    w_ih2 = params["w_ih2"].astype(f32)
    w_ih2x = w_ih2[:I]                        # X-block of the concat input
    w_ih2ab = w_ih2[I:]                       # [alpha_bin | beta_bin] block
    w_hh2 = params["w_hh2"].astype(f32)
    b_gi2 = gi_bias(params["b_ih2"], params["b_hh2"])
    b_hn2 = params["b_hh2"][2 * H:].astype(f32).reshape(1, H)

    # fused alpha_bin / beta_bin head
    w_abbb = jnp.concatenate([params["w_ab"], params["w_bb"]], axis=1).astype(f32)
    b_abbb = jnp.concatenate([params["b_ab"], params["b_bb"]]
                             ).astype(f32).reshape(1, A + Bn)
    # fused alpha / beta linear head (block diagonal)
    w_albe = jnp.zeros((A + Bn, 2), f32)
    w_albe = w_albe.at[:A, 0:1].set(params["w_la"].astype(f32))
    w_albe = w_albe.at[A:, 1:2].set(params["w_lb"].astype(f32))
    b_albe = jnp.concatenate([params["b_la"], params["b_lb"]]
                             ).astype(f32).reshape(1, 2)

    w_act = params["w_act"].astype(f32)
    b_act = params["b_act"].astype(f32).reshape(1, NA)

    inputs = (x_flat,
              w_ih1, b_gi1, w_hh1, b_hn1,
              w_abbb, b_abbb, w_albe, b_albe,
              w_ih2x, w_ih2ab, b_gi2, w_hh2, b_hn2,
              w_act, b_act)

    def blk_map(b, c):
        return (b * n_chunks + c, 0)

    in_specs = [pl.BlockSpec((tc * Bb, I), blk_map)]
    in_specs += [_full_spec(a) for a in inputs[1:]]

    out_shape = (
        jax.ShapeDtypeStruct((nb * T_pad * Bb, A + Bn), f32),
        jax.ShapeDtypeStruct((nb * T_pad * Bb, 2), f32),
        jax.ShapeDtypeStruct((nb * T_pad * Bb, NA), f32),
    )
    out_specs = (
        pl.BlockSpec((tc * Bb, A + Bn), blk_map),
        pl.BlockSpec((tc * Bb, 2), blk_map),
        pl.BlockSpec((tc * Bb, NA), blk_map),
    )

    abbb, albe, act = pl.pallas_call(
        gru_model_kernel,
        out_shape=out_shape,
        grid=(nb, n_chunks),
        in_specs=in_specs,
        out_specs=out_specs,
        scratch_shapes=[
            pltpu.VMEM((tc * Bb, 3 * H), jnp.float32),   # fused gi slab
            pltpu.VMEM((tc * Bb, H), jnp.float32),       # per-chunk hidden states
            pltpu.VMEM((Bb, H), jnp.float32),            # h1 carry across chunks
            pltpu.VMEM((Bb, H), jnp.float32),            # h2 carry across chunks
        ],
        compiler_params=pltpu.CompilerParams(
            dimension_semantics=("parallel", "arbitrary"),
            vmem_limit_bytes=32 * 1024 * 1024),
    )(*inputs)

    def unflatten(y):
        w = y.shape[-1]
        y = y.reshape(nb, T_pad, Bb, w)
        y = jnp.transpose(y, (0, 2, 1, 3)).reshape(Bp, T_pad, w)
        return y[:B, :T]                                  # drop padding

    abbb = unflatten(abbb)
    albe = unflatten(albe)
    act = unflatten(act)
    return {
        "alpha_bin": abbb[..., :A],
        "beta_bin": abbb[..., A:],
        "alpha": albe[..., 0:1],
        "beta": albe[..., 1:2],
        "action": act,
    }


# ---------------------------------------------------------------------------
# Pure-JAX reference (mirrors the PyTorch forward) for validation
# ---------------------------------------------------------------------------
def _gru_layer_ref(x, w_ih, w_hh, b_ih, b_hh):
    B, T, _ = x.shape
    H = w_hh.shape[0]

    def step(h, x_t):
        gi = x_t @ w_ih + b_ih
        gh = h @ w_hh + b_hh
        i_r, i_z, i_n = jnp.split(gi, 3, axis=-1)
        h_r, h_z, h_n = jnp.split(gh, 3, axis=-1)
        r = jax.nn.sigmoid(i_r + h_r)
        z = jax.nn.sigmoid(i_z + h_z)
        n = jnp.tanh(i_n + r * h_n)
        h_new = (1.0 - z) * n + z * h
        return h_new, h_new

    _, ys = lax.scan(step, jnp.zeros((B, H), jnp.float32),
                     jnp.transpose(x, (1, 0, 2)))
    return jnp.transpose(ys, (1, 0, 2))


def gru_forward_ref(X, p):
    y_hidden = _gru_layer_ref(X, p["w_ih1"], p["w_hh1"], p["b_ih1"], p["b_hh1"])
    ab = jax.nn.relu(y_hidden @ p["w_ab"] + p["b_ab"])
    bb = jax.nn.relu(y_hidden @ p["w_bb"] + p["b_bb"])
    alpha = ab @ p["w_la"] + p["b_la"]
    beta = bb @ p["w_lb"] + p["b_lb"]
    x_emb = jnp.concatenate([X, ab, bb], axis=2)
    y_action = _gru_layer_ref(x_emb, p["w_ih2"], p["w_hh2"], p["b_ih2"], p["b_hh2"])
    action = jax.nn.softmax(y_action @ p["w_act"] + p["b_act"], axis=-1)
    return {"alpha_bin": ab, "beta_bin": bb, "alpha": alpha, "beta": beta,
            "action": action}


# ---------------------------------------------------------------------------
# Deterministic parameter construction (matches PyTorch layer shapes)
# ---------------------------------------------------------------------------
def make_params(key, ninputs, hidden, alpha_nbins, beta_nbins, n_action):
    keys = jax.random.split(key, 20)
    it = iter(keys)

    def u(shape, fan_in):
        k = 1.0 / math.sqrt(fan_in)
        return jax.random.uniform(next(it), shape, jnp.float32, -k, k)

    emb_in = ninputs + alpha_nbins + beta_nbins
    return {
        # gru_input  (weights stored transposed: (in, 3H) / (H, 3H), [r|z|n])
        "w_ih1": u((ninputs, 3 * hidden), hidden),
        "w_hh1": u((hidden, 3 * hidden), hidden),
        "b_ih1": u((3 * hidden,), hidden),
        "b_hh1": u((3 * hidden,), hidden),
        # linear_alpha_bin / linear_beta_bin
        "w_ab": u((hidden, alpha_nbins), hidden),
        "b_ab": u((alpha_nbins,), hidden),
        "w_bb": u((hidden, beta_nbins), hidden),
        "b_bb": u((beta_nbins,), hidden),
        # linear_alpha / linear_beta
        "w_la": u((alpha_nbins, 1), alpha_nbins),
        "b_la": u((1,), alpha_nbins),
        "w_lb": u((beta_nbins, 1), beta_nbins),
        "b_lb": u((1,), beta_nbins),
        # gru_embedded
        "w_ih2": u((emb_in, 3 * hidden), hidden),
        "w_hh2": u((hidden, 3 * hidden), hidden),
        "b_ih2": u((3 * hidden,), hidden),
        "b_hh2": u((3 * hidden,), hidden),
        # linear_action
        "w_act": u((hidden, n_action), hidden),
        "b_act": u((n_action,), hidden),
    }


if __name__ == "__main__":
    # small "ds"-implied config: ninputs=4, hidden=32, alpha_nbins=8,
    # beta_nbins=8, action last_shape=4; batch=2, seq=8.
    B, T, I = 2, 8, 4
    H, A, Bn, NA = 32, 8, 8, 4

    key = jax.random.PRNGKey(0)
    kx, kp = jax.random.split(key)
    X = jax.random.normal(kx, (B, T, I), jnp.float32)
    params = make_params(kp, I, H, A, Bn, NA)

    out = jax.jit(gru_forward)(X, params)
    out = jax.block_until_ready(out)

    ref = jax.jit(gru_forward_ref)(X, params)
    ref = jax.block_until_ready(ref)

    for name in ("alpha_bin", "beta_bin", "alpha", "beta", "action"):
        assert out[name].shape == ref[name].shape, name
        np.testing.assert_allclose(np.asarray(out[name]), np.asarray(ref[name]),
                                   rtol=1e-3, atol=1e-3, err_msg=name)

    print("KERNEL_OK")
</pallas_src>

<mosaic_0001>
module attributes {stable_mosaic.version = 11 : i64} {
  func.func @gru_model_kernel(%arg0: i32, %arg1: i32, %arg2: memref<64x4xf32, #tpu.memory_space<vmem>>, %arg3: memref<4x96xf32, #tpu.memory_space<vmem>>, %arg4: memref<1x96xf32, #tpu.memory_space<vmem>>, %arg5: memref<32x96xf32, #tpu.memory_space<vmem>>, %arg6: memref<1x32xf32, #tpu.memory_space<vmem>>, %arg7: memref<32x16xf32, #tpu.memory_space<vmem>>, %arg8: memref<1x16xf32, #tpu.memory_space<vmem>>, %arg9: memref<16x2xf32, #tpu.memory_space<vmem>>, %arg10: memref<1x2xf32, #tpu.memory_space<vmem>>, %arg11: memref<4x96xf32, #tpu.memory_space<vmem>>, %arg12: memref<16x96xf32, #tpu.memory_space<vmem>>, %arg13: memref<1x96xf32, #tpu.memory_space<vmem>>, %arg14: memref<32x96xf32, #tpu.memory_space<vmem>>, %arg15: memref<1x32xf32, #tpu.memory_space<vmem>>, %arg16: memref<32x4xf32, #tpu.memory_space<vmem>>, %arg17: memref<1x4xf32, #tpu.memory_space<vmem>>, %arg18: memref<64x16xf32, #tpu.memory_space<vmem>>, %arg19: memref<64x2xf32, #tpu.memory_space<vmem>>, %arg20: memref<64x4xf32, #tpu.memory_space<vmem>>, %arg21: memref<64x96xf32, #tpu.memory_space<vmem>>, %arg22: memref<64x32xf32, #tpu.memory_space<vmem>>, %arg23: memref<8x32xf32, #tpu.memory_space<vmem>>, %arg24: memref<8x32xf32, #tpu.memory_space<vmem>>) attributes {dimension_semantics = [#tpu.dimension_semantics<parallel>, #tpu.dimension_semantics<arbitrary>], iteration_bounds = array<i64: 1, 1>, scalar_prefetch = 0 : i64, scratch_operands = 4 : i64, tpu.core_type = #tpu.core_type<tc>, window_params = [{transform_indices = @transform_0, window_bounds = array<i64: 64, 4>}, {pipeline_mode = #tpu.pipeline_mode<synchronous>, transform_indices = @transform_1, window_bounds = array<i64: 4, 96>}, {pipeline_mode = #tpu.pipeline_mode<synchronous>, transform_indices = @transform_2, window_bounds = array<i64: 1, 96>}, {pipeline_mode = #tpu.pipeline_mode<synchronous>, transform_indices = @transform_3, window_bounds = array<i64: 32, 96>}, {pipeline_mode = #tpu.pipeline_mode<synchronous>, transform_indices = @transform_4, window_bounds = array<i64: 1, 32>}, {pipeline_mode = #tpu.pipeline_mode<synchronous>, transform_indices = @transform_5, window_bounds = array<i64: 32, 16>}, {pipeline_mode = #tpu.pipeline_mode<synchronous>, transform_indices = @transform_6, window_bounds = array<i64: 1, 16>}, {pipeline_mode = #tpu.pipeline_mode<synchronous>, transform_indices = @transform_7, window_bounds = array<i64: 16, 2>}, {pipeline_mode = #tpu.pipeline_mode<synchronous>, transform_indices = @transform_8, window_bounds = array<i64: 1, 2>}, {pipeline_mode = #tpu.pipeline_mode<synchronous>, transform_indices = @transform_9, window_bounds = array<i64: 4, 96>}, {pipeline_mode = #tpu.pipeline_mode<synchronous>, transform_indices = @transform_10, window_bounds = array<i64: 16, 96>}, {pipeline_mode = #tpu.pipeline_mode<synchronous>, transform_indices = @transform_11, window_bounds = array<i64: 1, 96>}, {pipeline_mode = #tpu.pipeline_mode<synchronous>, transform_indices = @transform_12, window_bounds = array<i64: 32, 96>}, {pipeline_mode = #tpu.pipeline_mode<synchronous>, transform_indices = @transform_13, window_bounds = array<i64: 1, 32>}, {pipeline_mode = #tpu.pipeline_mode<synchronous>, transform_indices = @transform_14, window_bounds = array<i64: 32, 4>}, {pipeline_mode = #tpu.pipeline_mode<synchronous>, transform_indices = @transform_15, window_bounds = array<i64: 1, 4>}, {transform_indices = @transform_16, window_bounds = array<i64: 64, 16>}, {transform_indices = @transform_17, window_bounds = array<i64: 64, 2>}, {transform_indices = @transform_18, window_bounds = array<i64: 64, 4>}]} {
    %c0_i32 = arith.constant 0 : i32
    %0 = arith.cmpi eq, %arg1, %c0_i32 : i32
    %1 = arith.extui %0 : i1 to i32
    %c0_i32_0 = arith.constant 0 : i32
    %2 = arith.cmpi ne, %1, %c0_i32_0 : i32
    scf.if %2 {
      %cst_169 = arith.constant 0.000000e+00 : f32
      %512 = vector.broadcast %cst_169 : f32 to vector<8x32xf32>
      %c0_170 = arith.constant 0 : index
      %c0_171 = arith.constant 0 : index
      %513 = vector.load %arg23[%c0_170, %c0_171] : memref<8x32xf32, #tpu.memory_space<vmem>>, vector<8x32xf32>
      tpu.vector_store %arg23[%c0_170, %c0_171], %512 {strides = array<i32>} : memref<8x32xf32, #tpu.memory_space<vmem>>, vector<8x32xf32>,
      %cst_172 = arith.constant 0.000000e+00 : f32
      %514 = vector.broadcast %cst_172 : f32 to vector<8x32xf32>
      %c0_173 = arith.constant 0 : index
      %c0_174 = arith.constant 0 : index
      %515 = vector.load %arg24[%c0_173, %c0_174] : memref<8x32xf32, #tpu.memory_space<vmem>>, vector<8x32xf32>
      tpu.vector_store %arg24[%c0_173, %c0_174], %514 {strides = array<i32>} : memref<8x32xf32, #tpu.memory_space<vmem>>, vector<8x32xf32>,
    } else {
    }
    %c0 = arith.constant 0 : index
    %c0_1 = arith.constant 0 : index
    %3 = vector.load %arg2[%c0, %c0_1] : memref<64x4xf32, #tpu.memory_space<vmem>>, vector<64x4xf32>
    %c0_2 = arith.constant 0 : index
    %c0_3 = arith.constant 0 : index
    %4 = vector.load %arg3[%c0_2, %c0_3] : memref<4x96xf32, #tpu.memory_space<vmem>>, vector<4x96xf32>
    %cst = arith.constant dense<0.000000e+00> : vector<64x96xf32>
    %5 = tpu.matmul %3, %4, %cst {dimension_numbers = #tpu.dot_dimension_numbers<[1], [0], [0], [1], [0, 0, 1, 1], [], []>} : vector<64x4xf32>, vector<4x96xf32>, vector<64x96xf32> -> vector<64x96xf32>
    %c0_4 = arith.constant 0 : index
    %c0_5 = arith.constant 0 : index
    %6 = vector.load %arg4[%c0_4, %c0_5] : memref<1x96xf32, #tpu.memory_space<vmem>>, vector<1x96xf32>
    %7 = vector.broadcast %6 : vector<1x96xf32> to vector<64x96xf32>
    %8 = arith.addf %5, %7 : vector<64x96xf32>
    %c0_6 = arith.constant 0 : index
    %c0_7 = arith.constant 0 : index
    %9 = vector.load %arg21[%c0_6, %c0_7] : memref<64x96xf32, #tpu.memory_space<vmem>>, vector<64x96xf32>
    tpu.vector_store %arg21[%c0_6, %c0_7], %8 {strides = array<i32>} : memref<64x96xf32, #tpu.memory_space<vmem>>, vector<64x96xf32>,
    %c0_8 = arith.constant 0 : index
    %c0_9 = arith.constant 0 : index
    %10 = vector.load %arg5[%c0_8, %c0_9] : memref<32x96xf32, #tpu.memory_space<vmem>>, vector<32x96xf32>
    %c0_10 = arith.constant 0 : index
    %c0_11 = arith.constant 0 : index
    %11 = vector.load %arg6[%c0_10, %c0_11] : memref<1x32xf32, #tpu.memory_space<vmem>>, vector<1x32xf32>
    %12 = vector.shape_cast %11 : vector<1x32xf32> to vector<1x32xf32>
    %13 = vector.broadcast %12 : vector<1x32xf32> to vector<8x32xf32>
    %c0_12 = arith.constant 0 : index
    %c0_13 = arith.constant 0 : index
    %14 = vector.load %arg23[%c0_12, %c0_13] : memref<8x32xf32, #tpu.memory_space<vmem>>, vector<8x32xf32>
    %c0_i32_14 = arith.constant 0 : i32
    %c8_i32 = arith.constant 8 : i32
    %15 = arith.muli %c0_i32_14, %c8_i32 : i32
    %16 = tpu.assume_multiple %15, 8 : i32
    %cst_15 = arith.constant dense<0.000000e+00> : vector<8x96xf32>
    %17 = tpu.matmul %14, %10, %cst_15 {dimension_numbers = #tpu.dot_dimension_numbers<[1], [0], [0], [1], [0, 0, 1, 1], [], []>} : vector<8x32xf32>, vector<32x96xf32>, vector<8x96xf32> -> vector<8x96xf32>
    %18 = arith.index_cast %16 : i32 to index
    %c0_16 = arith.constant 0 : index
    %19 = vector.load %arg21[%18, %c0_16] : memref<64x96xf32, #tpu.memory_space<vmem>>, vector<8x96xf32>
    %20 = vector.extract_strided_slice %19 {offsets = [0, 0], sizes = [8, 64], strides = [1, 1]} : vector<8x96xf32> to vector<8x64xf32>
    %21 = vector.extract_strided_slice %17 {offsets = [0, 0], sizes = [8, 64], strides = [1, 1]} : vector<8x96xf32> to vector<8x64xf32>
    %22 = arith.addf %20, %21 : vector<8x64xf32>
    %23 = arith.negf %22 : vector<8x64xf32>
    %24 = math.exp %23 : vector<8x64xf32>
    %cst_17 = arith.constant 1.000000e+00 : f32
    %25 = vector.broadcast %cst_17 : f32 to vector<8x64xf32>
    %26 = arith.addf %25, %24 : vector<8x64xf32>
    %27 = arith.divf %25, %26 : vector<8x64xf32>
    %28 = vector.extract_strided_slice %27 {offsets = [0, 0], sizes = [8, 32], strides = [1, 1]} : vector<8x64xf32> to vector<8x32xf32>
    %29 = vector.extract_strided_slice %27 {offsets = [0, 32], sizes = [8, 32], strides = [1, 1]} : vector<8x64xf32> to vector<8x32xf32>
    %30 = vector.extract_strided_slice %19 {offsets = [0, 64], sizes = [8, 32], strides = [1, 1]} : vector<8x96xf32> to vector<8x32xf32>
    %31 = vector.extract_strided_slice %17 {offsets = [0, 64], sizes = [8, 32], strides = [1, 1]} : vector<8x96xf32> to vector<8x32xf32>
    %32 = arith.addf %31, %13 : vector<8x32xf32>
    %33 = arith.mulf %28, %32 : vector<8x32xf32>
    %34 = arith.addf %30, %33 : vector<8x32xf32>
    %35 = math.tanh %34 : vector<8x32xf32>
    %cst_18 = arith.constant 1.000000e+00 : f32
    %36 = vector.broadcast %cst_18 : f32 to vector<8x32xf32>
    %37 = arith.subf %36, %29 : vector<8x32xf32>
    %38 = arith.mulf %37, %35 : vector<8x32xf32>
    %39 = arith.mulf %29, %14 : vector<8x32xf32>
    %40 = arith.addf %38, %39 : vector<8x32xf32>
    %41 = arith.index_cast %16 : i32 to index
    %c0_19 = arith.constant 0 : index
    %42 = vector.load %arg22[%41, %c0_19] : memref<64x32xf32, #tpu.memory_space<vmem>>, vector<8x32xf32>
    tpu.vector_store %arg22[%41, %c0_19], %40 {strides = array<i32>} : memref<64x32xf32, #tpu.memory_space<vmem>>, vector<8x32xf32>,
    %c1_i32 = arith.constant 1 : i32
    %c8_i32_20 = arith.constant 8 : i32
    %43 = arith.muli %c1_i32, %c8_i32_20 : i32
    %44 = tpu.assume_multiple %43, 8 : i32
    %cst_21 = arith.constant dense<0.000000e+00> : vector<8x96xf32>
    %45 = tpu.matmul %40, %10, %cst_21 {dimension_numbers = #tpu.dot_dimension_numbers<[1], [0], [0], [1], [0, 0, 1, 1], [], []>} : vector<8x32xf32>, vector<32x96xf32>, vector<8x96xf32> -> vector<8x96xf32>
    %46 = arith.index_cast %44 : i32 to index
    %c0_22 = arith.constant 0 : index
    %47 = vector.load %arg21[%46, %c0_22] : memref<64x96xf32, #tpu.memory_space<vmem>>, vector<8x96xf32>
    %48 = vector.extract_strided_slice %47 {offsets = [0, 0], sizes = [8, 64], strides = [1, 1]} : vector<8x96xf32> to vector<8x64xf32>
    %49 = vector.extract_strided_slice %45 {offsets = [0, 0], sizes = [8, 64], strides = [1, 1]} : vector<8x96xf32> to vector<8x64xf32>
    %50 = arith.addf %48, %49 : vector<8x64xf32>
    %51 = arith.negf %50 : vector<8x64xf32>
    %52 = math.exp %51 : vector<8x64xf32>
    %cst_23 = arith.constant 1.000000e+00 : f32
    %53 = vector.broadcast %cst_23 : f32 to vector<8x64xf32>
    %54 = arith.addf %53, %52 : vector<8x64xf32>
    %55 = arith.divf %53, %54 : vector<8x64xf32>
    %56 = vector.extract_strided_slice %55 {offsets = [0, 0], sizes = [8, 32], strides = [1, 1]} : vector<8x64xf32> to vector<8x32xf32>
    %57 = vector.extract_strided_slice %55 {offsets = [0, 32], sizes = [8, 32], strides = [1, 1]} : vector<8x64xf32> to vector<8x32xf32>
    %58 = vector.extract_strided_slice %47 {offsets = [0, 64], sizes = [8, 32], strides = [1, 1]} : vector<8x96xf32> to vector<8x32xf32>
    %59 = vector.extract_strided_slice %45 {offsets = [0, 64], sizes = [8, 32], strides = [1, 1]} : vector<8x96xf32> to vector<8x32xf32>
    %60 = arith.addf %59, %13 : vector<8x32xf32>
    %61 = arith.mulf %56, %60 : vector<8x32xf32>
    %62 = arith.addf %58, %61 : vector<8x32xf32>
    %63 = math.tanh %62 : vector<8x32xf32>
    %cst_24 = arith.constant 1.000000e+00 : f32
    %64 = vector.broadcast %cst_24 : f32 to vector<8x32xf32>
    %65 = arith.subf %64, %57 : vector<8x32xf32>
    %66 = arith.mulf %65, %63 : vector<8x32xf32>
    %67 = arith.mulf %57, %40 : vector<8x32xf32>
    %68 = arith.addf %66, %67 : vector<8x32xf32>
    %69 = arith.index_cast %44 : i32 to index
    %c0_25 = arith.constant 0 : index
    %70 = vector.load %arg22[%69, %c0_25] : memref<64x32xf32, #tpu.memory_space<vmem>>, vector<8x32xf32>
    tpu.vector_store %arg22[%69, %c0_25], %68 {strides = array<i32>} : memref<64x32xf32, #tpu.memory_space<vmem>>, vector<8x32xf32>,
    %c2_i32 = arith.constant 2 : i32
    %c8_i32_26 = arith.constant 8 : i32
    %71 = arith.muli %c2_i32, %c8_i32_26 : i32
    %72 = tpu.assume_multiple %71, 8 : i32
    %cst_27 = arith.constant dense<0.000000e+00> : vector<8x96xf32>
    %73 = tpu.matmul %68, %10, %cst_27 {dimension_numbers = #tpu.dot_dimension_numbers<[1], [0], [0], [1], [0, 0, 1, 1], [], []>} : vector<8x32xf32>, vector<32x96xf32>, vector<8x96xf32> -> vector<8x96xf32>
    %74 = arith.index_cast %72 : i32 to index
    %c0_28 = arith.constant 0 : index
    %75 = vector.load %arg21[%74, %c0_28] : memref<64x96xf32, #tpu.memory_space<vmem>>, vector<8x96xf32>
    %76 = vector.extract_strided_slice %75 {offsets = [0, 0], sizes = [8, 64], strides = [1, 1]} : vector<8x96xf32> to vector<8x64xf32>
    %77 = vector.extract_strided_slice %73 {offsets = [0, 0], sizes = [8, 64], strides = [1, 1]} : vector<8x96xf32> to vector<8x64xf32>
    %78 = arith.addf %76, %77 : vector<8x64xf32>
    %79 = arith.negf %78 : vector<8x64xf32>
    %80 = math.exp %79 : vector<8x64xf32>
    %cst_29 = arith.constant 1.000000e+00 : f32
    %81 = vector.broadcast %cst_29 : f32 to vector<8x64xf32>
    %82 = arith.addf %81, %80 : vector<8x64xf32>
    %83 = arith.divf %81, %82 : vector<8x64xf32>
    %84 = vector.extract_strided_slice %83 {offsets = [0, 0], sizes = [8, 32], strides = [1, 1]} : vector<8x64xf32> to vector<8x32xf32>
    %85 = vector.extract_strided_slice %83 {offsets = [0, 32], sizes = [8, 32], strides = [1, 1]} : vector<8x64xf32> to vector<8x32xf32>
    %86 = vector.extract_strided_slice %75 {offsets = [0, 64], sizes = [8, 32], strides = [1, 1]} : vector<8x96xf32> to vector<8x32xf32>
    %87 = vector.extract_strided_slice %73 {offsets = [0, 64], sizes = [8, 32], strides = [1, 1]} : vector<8x96xf32> to vector<8x32xf32>
    %88 = arith.addf %87, %13 : vector<8x32xf32>
    %89 = arith.mulf %84, %88 : vector<8x32xf32>
    %90 = arith.addf %86, %89 : vector<8x32xf32>
    %91 = math.tanh %90 : vector<8x32xf32>
    %cst_30 = arith.constant 1.000000e+00 : f32
    %92 = vector.broadcast %cst_30 : f32 to vector<8x32xf32>
    %93 = arith.subf %92, %85 : vector<8x32xf32>
    %94 = arith.mulf %93, %91 : vector<8x32xf32>
    %95 = arith.mulf %85, %68 : vector<8x32xf32>
    %96 = arith.addf %94, %95 : vector<8x32xf32>
    %97 = arith.index_cast %72 : i32 to index
    %c0_31 = arith.constant 0 : index
    %98 = vector.load %arg22[%97, %c0_31] : memref<64x32xf32, #tpu.memory_space<vmem>>, vector<8x32xf32>
    tpu.vector_store %arg22[%97, %c0_31], %96 {strides = array<i32>} : memref<64x32xf32, #tpu.memory_space<vmem>>, vector<8x32xf32>,
    %c3_i32 = arith.constant 3 : i32
    %c8_i32_32 = arith.constant 8 : i32
    %99 = arith.muli %c3_i32, %c8_i32_32 : i32
    %100 = tpu.assume_multiple %99, 8 : i32
    %cst_33 = arith.constant dense<0.000000e+00> : vector<8x96xf32>
    %101 = tpu.matmul %96, %10, %cst_33 {dimension_numbers = #tpu.dot_dimension_numbers<[1], [0], [0], [1], [0, 0, 1, 1], [], []>} : vector<8x32xf32>, vector<32x96xf32>, vector<8x96xf32> -> vector<8x96xf32>
    %102 = arith.index_cast %100 : i32 to index
    %c0_34 = arith.constant 0 : index
    %103 = vector.load %arg21[%102, %c0_34] : memref<64x96xf32, #tpu.memory_space<vmem>>, vector<8x96xf32>
    %104 = vector.extract_strided_slice %103 {offsets = [0, 0], sizes = [8, 64], strides = [1, 1]} : vector<8x96xf32> to vector<8x64xf32>
    %105 = vector.extract_strided_slice %101 {offsets = [0, 0], sizes = [8, 64], strides = [1, 1]} : vector<8x96xf32> to vector<8x64xf32>
    %106 = arith.addf %104, %105 : vector<8x64xf32>
    %107 = arith.negf %106 : vector<8x64xf32>
    %108 = math.exp %107 : vector<8x64xf32>
    %cst_35 = arith.constant 1.000000e+00 : f32
    %109 = vector.broadcast %cst_35 : f32 to vector<8x64xf32>
    %110 = arith.addf %109, %108 : vector<8x64xf32>
    %111 = arith.divf %109, %110 : vector<8x64xf32>
    %112 = vector.extract_strided_slice %111 {offsets = [0, 0], sizes = [8, 32], strides = [1, 1]} : vector<8x64xf32> to vector<8x32xf32>
    %113 = vector.extract_strided_slice %111 {offsets = [0, 32], sizes = [8, 32], strides = [1, 1]} : vector<8x64xf32> to vector<8x32xf32>
    %114 = vector.extract_strided_slice %103 {offsets = [0, 64], sizes = [8, 32], strides = [1, 1]} : vector<8x96xf32> to vector<8x32xf32>
    %115 = vector.extract_strided_slice %101 {offsets = [0, 64], sizes = [8, 32], strides = [1, 1]} : vector<8x96xf32> to vector<8x32xf32>
    %116 = arith.addf %115, %13 : vector<8x32xf32>
    %117 = arith.mulf %112, %116 : vector<8x32xf32>
    %118 = arith.addf %114, %117 : vector<8x32xf32>
    %119 = math.tanh %118 : vector<8x32xf32>
    %cst_36 = arith.constant 1.000000e+00 : f32
    %120 = vector.broadcast %cst_36 : f32 to vector<8x32xf32>
    %121 = arith.subf %120, %113 : vector<8x32xf32>
    %122 = arith.mulf %121, %119 : vector<8x32xf32>
    %123 = arith.mulf %113, %96 : vector<8x32xf32>
    %124 = arith.addf %122, %123 : vector<8x32xf32>
    %125 = arith.index_cast %100 : i32 to index
    %c0_37 = arith.constant 0 : index
    %126 = vector.load %arg22[%125, %c0_37] : memref<64x32xf32, #tpu.memory_space<vmem>>, vector<8x32xf32>
    tpu.vector_store %arg22[%125, %c0_37], %124 {strides = array<i32>} : memref<64x32xf32, #tpu.memory_space<vmem>>, vector<8x32xf32>,
    %c4_i32 = arith.constant 4 : i32
    %c8_i32_38 = arith.constant 8 : i32
    %127 = arith.muli %c4_i32, %c8_i32_38 : i32
    %128 = tpu.assume_multiple %127, 8 : i32
    %cst_39 = arith.constant dense<0.000000e+00> : vector<8x96xf32>
    %129 = tpu.matmul %124, %10, %cst_39 {dimension_numbers = #tpu.dot_dimension_numbers<[1], [0], [0], [1], [0, 0, 1, 1], [], []>} : vector<8x32xf32>, vector<32x96xf32>, vector<8x96xf32> -> vector<8x96xf32>
    %130 = arith.index_cast %128 : i32 to index
    %c0_40 = arith.constant 0 : index
    %131 = vector.load %arg21[%130, %c0_40] : memref<64x96xf32, #tpu.memory_space<vmem>>, vector<8x96xf32>
    %132 = vector.extract_strided_slice %131 {offsets = [0, 0], sizes = [8, 64], strides = [1, 1]} : vector<8x96xf32> to vector<8x64xf32>
    %133 = vector.extract_strided_slice %129 {offsets = [0, 0], sizes = [8, 64], strides = [1, 1]} : vector<8x96xf32> to vector<8x64xf32>
    %134 = arith.addf %132, %133 : vector<8x64xf32>
    %135 = arith.negf %134 : vector<8x64xf32>
    %136 = math.exp %135 : vector<8x64xf32>
    %cst_41 = arith.constant 1.000000e+00 : f32
    %137 = vector.broadcast %cst_41 : f32 to vector<8x64xf32>
    %138 = arith.addf %137, %136 : vector<8x64xf32>
    %139 = arith.divf %137, %138 : vector<8x64xf32>
    %140 = vector.extract_strided_slice %139 {offsets = [0, 0], sizes = [8, 32], strides = [1, 1]} : vector<8x64xf32> to vector<8x32xf32>
    %141 = vector.extract_strided_slice %139 {offsets = [0, 32], sizes = [8, 32], strides = [1, 1]} : vector<8x64xf32> to vector<8x32xf32>
    %142 = vector.extract_strided_slice %131 {offsets = [0, 64], sizes = [8, 32], strides = [1, 1]} : vector<8x96xf32> to vector<8x32xf32>
    %143 = vector.extract_strided_slice %129 {offsets = [0, 64], sizes = [8, 32], strides = [1, 1]} : vector<8x96xf32> to vector<8x32xf32>
    %144 = arith.addf %143, %13 : vector<8x32xf32>
    %145 = arith.mulf %140, %144 : vector<8x32xf32>
    %146 = arith.addf %142, %145 : vector<8x32xf32>
    %147 = math.tanh %146 : vector<8x32xf32>
    %cst_42 = arith.constant 1.000000e+00 : f32
    %148 = vector.broadcast %cst_42 : f32 to vector<8x32xf32>
    %149 = arith.subf %148, %141 : vector<8x32xf32>
    %150 = arith.mulf %149, %147 : vector<8x32xf32>
    %151 = arith.mulf %141, %124 : vector<8x32xf32>
    %152 = arith.addf %150, %151 : vector<8x32xf32>
    %153 = arith.index_cast %128 : i32 to index
    %c0_43 = arith.constant 0 : index
    %154 = vector.load %arg22[%153, %c0_43] : memref<64x32xf32, #tpu.memory_space<vmem>>, vector<8x32xf32>
    tpu.vector_store %arg22[%153, %c0_43], %152 {strides = array<i32>} : memref<64x32xf32, #tpu.memory_space<vmem>>, vector<8x32xf32>,
    %c5_i32 = arith.constant 5 : i32
    %c8_i32_44 = arith.constant 8 : i32
    %155 = arith.muli %c5_i32, %c8_i32_44 : i32
    %156 = tpu.assume_multiple %155, 8 : i32
    %cst_45 = arith.constant dense<0.000000e+00> : vector<8x96xf32>
    %157 = tpu.matmul %152, %10, %cst_45 {dimension_numbers = #tpu.dot_dimension_numbers<[1], [0], [0], [1], [0, 0, 1, 1], [], []>} : vector<8x32xf32>, vector<32x96xf32>, vector<8x96xf32> -> vector<8x96xf32>
    %158 = arith.index_cast %156 : i32 to index
    %c0_46 = arith.constant 0 : index
    %159 = vector.load %arg21[%158, %c0_46] : memref<64x96xf32, #tpu.memory_space<vmem>>, vector<8x96xf32>
    %160 = vector.extract_strided_slice %159 {offsets = [0, 0], sizes = [8, 64], strides = [1, 1]} : vector<8x96xf32> to vector<8x64xf32>
    %161 = vector.extract_strided_slice %157 {offsets = [0, 0], sizes = [8, 64], strides = [1, 1]} : vector<8x96xf32> to vector<8x64xf32>
    %162 = arith.addf %160, %161 : vector<8x64xf32>
    %163 = arith.negf %162 : vector<8x64xf32>
    %164 = math.exp %163 : vector<8x64xf32>
    %cst_47 = arith.constant 1.000000e+00 : f32
    %165 = vector.broadcast %cst_47 : f32 to vector<8x64xf32>
    %166 = arith.addf %165, %164 : vector<8x64xf32>
    %167 = arith.divf %165, %166 : vector<8x64xf32>
    %168 = vector.extract_strided_slice %167 {offsets = [0, 0], sizes = [8, 32], strides = [1, 1]} : vector<8x64xf32> to vector<8x32xf32>
    %169 = vector.extract_strided_slice %167 {offsets = [0, 32], sizes = [8, 32], strides = [1, 1]} : vector<8x64xf32> to vector<8x32xf32>
    %170 = vector.extract_strided_slice %159 {offsets = [0, 64], sizes = [8, 32], strides = [1, 1]} : vector<8x96xf32> to vector<8x32xf32>
    %171 = vector.extract_strided_slice %157 {offsets = [0, 64], sizes = [8, 32], strides = [1, 1]} : vector<8x96xf32> to vector<8x32xf32>
    %172 = arith.addf %171, %13 : vector<8x32xf32>
    %173 = arith.mulf %168, %172 : vector<8x32xf32>
    %174 = arith.addf %170, %173 : vector<8x32xf32>
    %175 = math.tanh %174 : vector<8x32xf32>
    %cst_48 = arith.constant 1.000000e+00 : f32
    %176 = vector.broadcast %cst_48 : f32 to vector<8x32xf32>
    %177 = arith.subf %176, %169 : vector<8x32xf32>
    %178 = arith.mulf %177, %175 : vector<8x32xf32>
    %179 = arith.mulf %169, %152 : vector<8x32xf32>
    %180 = arith.addf %178, %179 : vector<8x32xf32>
    %181 = arith.index_cast %156 : i32 to index
    %c0_49 = arith.constant 0 : index
    %182 = vector.load %arg22[%181, %c0_49] : memref<64x32xf32, #tpu.memory_space<vmem>>, vector<8x32xf32>
    tpu.vector_store %arg22[%181, %c0_49], %180 {strides = array<i32>} : memref<64x32xf32, #tpu.memory_space<vmem>>, vector<8x32xf32>,
    %c6_i32 = arith.constant 6 : i32
    %c8_i32_50 = arith.constant 8 : i32
    %183 = arith.muli %c6_i32, %c8_i32_50 : i32
    %184 = tpu.assume_multiple %183, 8 : i32
    %cst_51 = arith.constant dense<0.000000e+00> : vector<8x96xf32>
    %185 = tpu.matmul %180, %10, %cst_51 {dimension_numbers = #tpu.dot_dimension_numbers<[1], [0], [0], [1], [0, 0, 1, 1], [], []>} : vector<8x32xf32>, vector<32x96xf32>, vector<8x96xf32> -> vector<8x96xf32>
    %186 = arith.index_cast %184 : i32 to index
    %c0_52 = arith.constant 0 : index
    %187 = vector.load %arg21[%186, %c0_52] : memref<64x96xf32, #tpu.memory_space<vmem>>, vector<8x96xf32>
    %188 = vector.extract_strided_slice %187 {offsets = [0, 0], sizes = [8, 64], strides = [1, 1]} : vector<8x96xf32> to vector<8x64xf32>
    %189 = vector.extract_strided_slice %185 {offsets = [0, 0], sizes = [8, 64], strides = [1, 1]} : vector<8x96xf32> to vector<8x64xf32>
    %190 = arith.addf %188, %189 : vector<8x64xf32>
    %191 = arith.negf %190 : vector<8x64xf32>
    %192 = math.exp %191 : vector<8x64xf32>
    %cst_53 = arith.constant 1.000000e+00 : f32
    %193 = vector.broadcast %cst_53 : f32 to vector<8x64xf32>
    %194 = arith.addf %193, %192 : vector<8x64xf32>
    %195 = arith.divf %193, %194 : vector<8x64xf32>
    %196 = vector.extract_strided_slice %195 {offsets = [0, 0], sizes = [8, 32], strides = [1, 1]} : vector<8x64xf32> to vector<8x32xf32>
    %197 = vector.extract_strided_slice %195 {offsets = [0, 32], sizes = [8, 32], strides = [1, 1]} : vector<8x64xf32> to vector<8x32xf32>
    %198 = vector.extract_strided_slice %187 {offsets = [0, 64], sizes = [8, 32], strides = [1, 1]} : vector<8x96xf32> to vector<8x32xf32>
    %199 = vector.extract_strided_slice %185 {offsets = [0, 64], sizes = [8, 32], strides = [1, 1]} : vector<8x96xf32> to vector<8x32xf32>
    %200 = arith.addf %199, %13 : vector<8x32xf32>
    %201 = arith.mulf %196, %200 : vector<8x32xf32>
    %202 = arith.addf %198, %201 : vector<8x32xf32>
    %203 = math.tanh %202 : vector<8x32xf32>
    %cst_54 = arith.constant 1.000000e+00 : f32
    %204 = vector.broadcast %cst_54 : f32 to vector<8x32xf32>
    %205 = arith.subf %204, %197 : vector<8x32xf32>
    %206 = arith.mulf %205, %203 : vector<8x32xf32>
    %207 = arith.mulf %197, %180 : vector<8x32xf32>
    %208 = arith.addf %206, %207 : vector<8x32xf32>
    %209 = arith.index_cast %184 : i32 to index
    %c0_55 = arith.constant 0 : index
    %210 = vector.load %arg22[%209, %c0_55] : memref<64x32xf32, #tpu.memory_space<vmem>>, vector<8x32xf32>
    tpu.vector_store %arg22[%209, %c0_55], %208 {strides = array<i32>} : memref<64x32xf32, #tpu.memory_space<vmem>>, vector<8x32xf32>,
    %c7_i32 = arith.constant 7 : i32
    %c8_i32_56 = arith.constant 8 : i32
    %211 = arith.muli %c7_i32, %c8_i32_56 : i32
    %212 = tpu.assume_multiple %211, 8 : i32
    %cst_57 = arith.constant dense<0.000000e+00> : vector<8x96xf32>
    %213 = tpu.matmul %208, %10, %cst_57 {dimension_numbers = #tpu.dot_dimension_numbers<[1], [0], [0], [1], [0, 0, 1, 1], [], []>} : vector<8x32xf32>, vector<32x96xf32>, vector<8x96xf32> -> vector<8x96xf32>
    %214 = arith.index_cast %212 : i32 to index
    %c0_58 = arith.constant 0 : index
    %215 = vector.load %arg21[%214, %c0_58] : memref<64x96xf32, #tpu.memory_space<vmem>>, vector<8x96xf32>
    %216 = vector.extract_strided_slice %215 {offsets = [0, 0], sizes = [8, 64], strides = [1, 1]} : vector<8x96xf32> to vector<8x64xf32>
    %217 = vector.extract_strided_slice %213 {offsets = [0, 0], sizes = [8, 64], strides = [1, 1]} : vector<8x96xf32> to vector<8x64xf32>
    %218 = arith.addf %216, %217 : vector<8x64xf32>
    %219 = arith.negf %218 : vector<8x64xf32>
    %220 = math.exp %219 : vector<8x64xf32>
    %cst_59 = arith.constant 1.000000e+00 : f32
    %221 = vector.broadcast %cst_59 : f32 to vector<8x64xf32>
    %222 = arith.addf %221, %220 : vector<8x64xf32>
    %223 = arith.divf %221, %222 : vector<8x64xf32>
    %224 = vector.extract_strided_slice %223 {offsets = [0, 0], sizes = [8, 32], strides = [1, 1]} : vector<8x64xf32> to vector<8x32xf32>
    %225 = vector.extract_strided_slice %223 {offsets = [0, 32], sizes = [8, 32], strides = [1, 1]} : vector<8x64xf32> to vector<8x32xf32>
    %226 = vector.extract_strided_slice %215 {offsets = [0, 64], sizes = [8, 32], strides = [1, 1]} : vector<8x96xf32> to vector<8x32xf32>
    %227 = vector.extract_strided_slice %213 {offsets = [0, 64], sizes = [8, 32], strides = [1, 1]} : vector<8x96xf32> to vector<8x32xf32>
    %228 = arith.addf %227, %13 : vector<8x32xf32>
    %229 = arith.mulf %224, %228 : vector<8x32xf32>
    %230 = arith.addf %226, %229 : vector<8x32xf32>
    %231 = math.tanh %230 : vector<8x32xf32>
    %cst_60 = arith.constant 1.000000e+00 : f32
    %232 = vector.broadcast %cst_60 : f32 to vector<8x32xf32>
    %233 = arith.subf %232, %225 : vector<8x32xf32>
    %234 = arith.mulf %233, %231 : vector<8x32xf32>
    %235 = arith.mulf %225, %208 : vector<8x32xf32>
    %236 = arith.addf %234, %235 : vector<8x32xf32>
    %237 = arith.index_cast %212 : i32 to index
    %c0_61 = arith.constant 0 : index
    %238 = vector.load %arg22[%237, %c0_61] : memref<64x32xf32, #tpu.memory_space<vmem>>, vector<8x32xf32>
    tpu.vector_store %arg22[%237, %c0_61], %236 {strides = array<i32>} : memref<64x32xf32, #tpu.memory_space<vmem>>, vector<8x32xf32>,
    %c8_i32_62 = arith.constant 8 : i32
    %c0_63 = arith.constant 0 : index
    %c0_64 = arith.constant 0 : index
    %239 = vector.load %arg23[%c0_63, %c0_64] : memref<8x32xf32, #tpu.memory_space<vmem>>, vector<8x32xf32>
    tpu.vector_store %arg23[%c0_63, %c0_64], %236 {strides = array<i32>} : memref<8x32xf32, #tpu.memory_space<vmem>>, vector<8x32xf32>,
    %c0_65 = arith.constant 0 : index
    %c0_66 = arith.constant 0 : index
    %240 = vector.load %arg22[%c0_65, %c0_66] : memref<64x32xf32, #tpu.memory_space<vmem>>, vector<64x32xf32>
    %c0_67 = arith.constant 0 : index
    %c0_68 = arith.constant 0 : index
    %241 = vector.load %arg7[%c0_67, %c0_68] : memref<32x16xf32, #tpu.memory_space<vmem>>, vector<32x16xf32>
    %cst_69 = arith.constant dense<0.000000e+00> : vector<64x16xf32>
    %242 = tpu.matmul %240, %241, %cst_69 {dimension_numbers = #tpu.dot_dimension_numbers<[1], [0], [0], [1], [0, 0, 1, 1], [], []>} : vector<64x32xf32>, vector<32x16xf32>, vector<64x16xf32> -> vector<64x16xf32>
    %c0_70 = arith.constant 0 : index
    %c0_71 = arith.constant 0 : index
    %243 = vector.load %arg8[%c0_70, %c0_71] : memref<1x16xf32, #tpu.memory_space<vmem>>, vector<1x16xf32>
    %244 = vector.broadcast %243 : vector<1x16xf32> to vector<64x16xf32>
    %245 = arith.addf %242, %244 : vector<64x16xf32>
    %cst_72 = arith.constant 0.000000e+00 : f32
    %246 = vector.broadcast %cst_72 : f32 to vector<64x16xf32>
    %247 = arith.maximumf %245, %246 : vector<64x16xf32>
    %c0_73 = arith.constant 0 : index
    %c0_74 = arith.constant 0 : index
    %248 = vector.load %arg18[%c0_73, %c0_74] : memref<64x16xf32, #tpu.memory_space<vmem>>, vector<64x16xf32>
    tpu.vector_store %arg18[%c0_73, %c0_74], %247 {strides = array<i32>} : memref<64x16xf32, #tpu.memory_space<vmem>>, vector<64x16xf32>,
    %c0_75 = arith.constant 0 : index
    %c0_76 = arith.constant 0 : index
    %249 = vector.load %arg9[%c0_75, %c0_76] : memref<16x2xf32, #tpu.memory_space<vmem>>, vector<16x2xf32>
    %cst_77 = arith.constant dense<0.000000e+00> : vector<64x2xf32>
    %250 = tpu.matmul %247, %249, %cst_77 {dimension_numbers = #tpu.dot_dimension_numbers<[1], [0], [0], [1], [0, 0, 1, 1], [], []>} : vector<64x16xf32>, vector<16x2xf32>, vector<64x2xf32> -> vector<64x2xf32>
    %c0_78 = arith.constant 0 : index
    %c0_79 = arith.constant 0 : index
    %251 = vector.load %arg10[%c0_78, %c0_79] : memref<1x2xf32, #tpu.memory_space<vmem>>, vector<1x2xf32>
    %252 = vector.broadcast %251 : vector<1x2xf32> to vector<64x2xf32>
    %253 = arith.addf %250, %252 : vector<64x2xf32>
    %c0_80 = arith.constant 0 : index
    %c0_81 = arith.constant 0 : index
    %254 = vector.load %arg19[%c0_80, %c0_81] : memref<64x2xf32, #tpu.memory_space<vmem>>, vector<64x2xf32>
    tpu.vector_store %arg19[%c0_80, %c0_81], %253 {strides = array<i32>} : memref<64x2xf32, #tpu.memory_space<vmem>>, vector<64x2xf32>,
    %c0_82 = arith.constant 0 : index
    %c0_83 = arith.constant 0 : index
    %255 = vector.load %arg11[%c0_82, %c0_83] : memref<4x96xf32, #tpu.memory_space<vmem>>, vector<4x96xf32>
    %cst_84 = arith.constant dense<0.000000e+00> : vector<64x96xf32>
    %256 = tpu.matmul %3, %255, %cst_84 {dimension_numbers = #tpu.dot_dimension_numbers<[1], [0], [0], [1], [0, 0, 1, 1], [], []>} : vector<64x4xf32>, vector<4x96xf32>, vector<64x96xf32> -> vector<64x96xf32>
    %c0_85 = arith.constant 0 : index
    %c0_86 = arith.constant 0 : index
    %257 = vector.load %arg12[%c0_85, %c0_86] : memref<16x96xf32, #tpu.memory_space<vmem>>, vector<16x96xf32>
    %cst_87 = arith.constant dense<0.000000e+00> : vector<64x96xf32>
    %258 = tpu.matmul %247, %257, %cst_87 {dimension_numbers = #tpu.dot_dimension_numbers<[1], [0], [0], [1], [0, 0, 1, 1], [], []>} : vector<64x16xf32>, vector<16x96xf32>, vector<64x96xf32> -> vector<64x96xf32>
    %259 = arith.addf %256, %258 : vector<64x96xf32>
    %c0_88 = arith.constant 0 : index
    %c0_89 = arith.constant 0 : index
    %260 = vector.load %arg13[%c0_88, %c0_89] : memref<1x96xf32, #tpu.memory_space<vmem>>, vector<1x96xf32>
    %261 = vector.broadcast %260 : vector<1x96xf32> to vector<64x96xf32>
    %262 = arith.addf %259, %261 : vector<64x96xf32>
    %c0_90 = arith.constant 0 : index
    %c0_91 = arith.constant 0 : index
    %263 = vector.load %arg21[%c0_90, %c0_91] : memref<64x96xf32, #tpu.memory_space<vmem>>, vector<64x96xf32>
    tpu.vector_store %arg21[%c0_90, %c0_91], %262 {strides = array<i32>} : memref<64x96xf32, #tpu.memory_space<vmem>>, vector<64x96xf32>,
    %c0_92 = arith.constant 0 : index
    %c0_93 = arith.constant 0 : index
    %264 = vector.load %arg14[%c0_92, %c0_93] : memref<32x96xf32, #tpu.memory_space<vmem>>, vector<32x96xf32>
    %c0_94 = arith.constant 0 : index
    %c0_95 = arith.constant 0 : index
    %265 = vector.load %arg15[%c0_94, %c0_95] : memref<1x32xf32, #tpu.memory_space<vmem>>, vector<1x32xf32>
    %266 = vector.shape_cast %265 : vector<1x32xf32> to vector<1x32xf32>
    %267 = vector.broadcast %266 : vector<1x32xf32> to vector<8x32xf32>
    %c0_96 = arith.constant 0 : index
    %c0_97 = arith.constant 0 : index
    %268 = vector.load %arg24[%c0_96, %c0_97] : memref<8x32xf32, #tpu.memory_space<vmem>>, vector<8x32xf32>
    %c0_i32_98 = arith.constant 0 : i32
    %c8_i32_99 = arith.constant 8 : i32
    %269 = arith.muli %c0_i32_98, %c8_i32_99 : i32
    %270 = tpu.assume_multiple %269, 8 : i32
    %cst_100 = arith.constant dense<0.000000e+00> : vector<8x96xf32>
    %271 = tpu.matmul %268, %264, %cst_100 {dimension_numbers = #tpu.dot_dimension_numbers<[1], [0], [0], [1], [0, 0, 1, 1], [], []>} : vector<8x32xf32>, vector<32x96xf32>, vector<8x96xf32> -> vector<8x96xf32>
    %272 = arith.index_cast %270 : i32 to index
    %c0_101 = arith.constant 0 : index
    %273 = vector.load %arg21[%272, %c0_101] : memref<64x96xf32, #tpu.memory_space<vmem>>, vector<8x96xf32>
    %274 = vector.extract_strided_slice %273 {offsets = [0, 0], sizes = [8, 64], strides = [1, 1]} : vector<8x96xf32> to vector<8x64xf32>
    %275 = vector.extract_strided_slice %271 {offsets = [0, 0], sizes = [8, 64], strides = [1, 1]} : vector<8x96xf32> to vector<8x64xf32>
    %276 = arith.addf %274, %275 : vector<8x64xf32>
    %277 = arith.negf %276 : vector<8x64xf32>
    %278 = math.exp %277 : vector<8x64xf32>
    %cst_102 = arith.constant 1.000000e+00 : f32
    %279 = vector.broadcast %cst_102 : f32 to vector<8x64xf32>
    %280 = arith.addf %279, %278 : vector<8x64xf32>
    %281 = arith.divf %279, %280 : vector<8x64xf32>
    %282 = vector.extract_strided_slice %281 {offsets = [0, 0], sizes = [8, 32], strides = [1, 1]} : vector<8x64xf32> to vector<8x32xf32>
    %283 = vector.extract_strided_slice %281 {offsets = [0, 32], sizes = [8, 32], strides = [1, 1]} : vector<8x64xf32> to vector<8x32xf32>
    %284 = vector.extract_strided_slice %273 {offsets = [0, 64], sizes = [8, 32], strides = [1, 1]} : vector<8x96xf32> to vector<8x32xf32>
    %285 = vector.extract_strided_slice %271 {offsets = [0, 64], sizes = [8, 32], strides = [1, 1]} : vector<8x96xf32> to vector<8x32xf32>
    %286 = arith.addf %285, %267 : vector<8x32xf32>
    %287 = arith.mulf %282, %286 : vector<8x32xf32>
    %288 = arith.addf %284, %287 : vector<8x32xf32>
    %289 = math.tanh %288 : vector<8x32xf32>
    %cst_103 = arith.constant 1.000000e+00 : f32
    %290 = vector.broadcast %cst_103 : f32 to vector<8x32xf32>
    %291 = arith.subf %290, %283 : vector<8x32xf32>
    %292 = arith.mulf %291, %289 : vector<8x32xf32>
    %293 = arith.mulf %283, %268 : vector<8x32xf32>
    %294 = arith.addf %292, %293 : vector<8x32xf32>
    %295 = arith.index_cast %270 : i32 to index
    %c0_104 = arith.constant 0 : index
    %296 = vector.load %arg22[%295, %c0_104] : memref<64x32xf32, #tpu.memory_space<vmem>>, vector<8x32xf32>
    tpu.vector_store %arg22[%295, %c0_104], %294 {strides = array<i32>} : memref<64x32xf32, #tpu.memory_space<vmem>>, vector<8x32xf32>,
    %c1_i32_105 = arith.constant 1 : i32
    %c8_i32_106 = arith.constant 8 : i32
    %297 = arith.muli %c1_i32_105, %c8_i32_106 : i32
    %298 = tpu.assume_multiple %297, 8 : i32
    %cst_107 = arith.constant dense<0.000000e+00> : vector<8x96xf32>
    %299 = tpu.matmul %294, %264, %cst_107 {dimension_numbers = #tpu.dot_dimension_numbers<[1], [0], [0], [1], [0, 0, 1, 1], [], []>} : vector<8x32xf32>, vector<32x96xf32>, vector<8x96xf32> -> vector<8x96xf32>
    %300 = arith.index_cast %298 : i32 to index
    %c0_108 = arith.constant 0 : index
    %301 = vector.load %arg21[%300, %c0_108] : memref<64x96xf32, #tpu.memory_space<vmem>>, vector<8x96xf32>
    %302 = vector.extract_strided_slice %301 {offsets = [0, 0], sizes = [8, 64], strides = [1, 1]} : vector<8x96xf32> to vector<8x64xf32>
    %303 = vector.extract_strided_slice %299 {offsets = [0, 0], sizes = [8, 64], strides = [1, 1]} : vector<8x96xf32> to vector<8x64xf32>
    %304 = arith.addf %302, %303 : vector<8x64xf32>
    %305 = arith.negf %304 : vector<8x64xf32>
    %306 = math.exp %305 : vector<8x64xf32>
    %cst_109 = arith.constant 1.000000e+00 : f32
    %307 = vector.broadcast %cst_109 : f32 to vector<8x64xf32>
    %308 = arith.addf %307, %306 : vector<8x64xf32>
    %309 = arith.divf %307, %308 : vector<8x64xf32>
    %310 = vector.extract_strided_slice %309 {offsets = [0, 0], sizes = [8, 32], strides = [1, 1]} : vector<8x64xf32> to vector<8x32xf32>
    %311 = vector.extract_strided_slice %309 {offsets = [0, 32], sizes = [8, 32], strides = [1, 1]} : vector<8x64xf32> to vector<8x32xf32>
    %312 = vector.extract_strided_slice %301 {offsets = [0, 64], sizes = [8, 32], strides = [1, 1]} : vector<8x96xf32> to vector<8x32xf32>
    %313 = vector.extract_strided_slice %299 {offsets = [0, 64], sizes = [8, 32], strides = [1, 1]} : vector<8x96xf32> to vector<8x32xf32>
    %314 = arith.addf %313, %267 : vector<8x32xf32>
    %315 = arith.mulf %310, %314 : vector<8x32xf32>
    %316 = arith.addf %312, %315 : vector<8x32xf32>
    %317 = math.tanh %316 : vector<8x32xf32>
    %cst_110 = arith.constant 1.000000e+00 : f32
    %318 = vector.broadcast %cst_110 : f32 to vector<8x32xf32>
    %319 = arith.subf %318, %311 : vector<8x32xf32>
    %320 = arith.mulf %319, %317 : vector<8x32xf32>
    %321 = arith.mulf %311, %294 : vector<8x32xf32>
    %322 = arith.addf %320, %321 : vector<8x32xf32>
    %323 = arith.index_cast %298 : i32 to index
    %c0_111 = arith.constant 0 : index
    %324 = vector.load %arg22[%323, %c0_111] : memref<64x32xf32, #tpu.memory_space<vmem>>, vector<8x32xf32>
    tpu.vector_store %arg22[%323, %c0_111], %322 {strides = array<i32>} : memref<64x32xf32, #tpu.memory_space<vmem>>, vector<8x32xf32>,
    %c2_i32_112 = arith.constant 2 : i32
    %c8_i32_113 = arith.constant 8 : i32
    %325 = arith.muli %c2_i32_112, %c8_i32_113 : i32
    %326 = tpu.assume_multiple %325, 8 : i32
    %cst_114 = arith.constant dense<0.000000e+00> : vector<8x96xf32>
    %327 = tpu.matmul %322, %264, %cst_114 {dimension_numbers = #tpu.dot_dimension_numbers<[1], [0], [0], [1], [0, 0, 1, 1], [], []>} : vector<8x32xf32>, vector<32x96xf32>, vector<8x96xf32> -> vector<8x96xf32>
    %328 = arith.index_cast %326 : i32 to index
    %c0_115 = arith.constant 0 : index
    %329 = vector.load %arg21[%328, %c0_115] : memref<64x96xf32, #tpu.memory_space<vmem>>, vector<8x96xf32>
    %330 = vector.extract_strided_slice %329 {offsets = [0, 0], sizes = [8, 64], strides = [1, 1]} : vector<8x96xf32> to vector<8x64xf32>
    %331 = vector.extract_strided_slice %327 {offsets = [0, 0], sizes = [8, 64], strides = [1, 1]} : vector<8x96xf32> to vector<8x64xf32>
    %332 = arith.addf %330, %331 : vector<8x64xf32>
    %333 = arith.negf %332 : vector<8x64xf32>
    %334 = math.exp %333 : vector<8x64xf32>
    %cst_116 = arith.constant 1.000000e+00 : f32
    %335 = vector.broadcast %cst_116 : f32 to vector<8x64xf32>
    %336 = arith.addf %335, %334 : vector<8x64xf32>
    %337 = arith.divf %335, %336 : vector<8x64xf32>
    %338 = vector.extract_strided_slice %337 {offsets = [0, 0], sizes = [8, 32], strides = [1, 1]} : vector<8x64xf32> to vector<8x32xf32>
    %339 = vector.extract_strided_slice %337 {offsets = [0, 32], sizes = [8, 32], strides = [1, 1]} : vector<8x64xf32> to vector<8x32xf32>
    %340 = vector.extract_strided_slice %329 {offsets = [0, 64], sizes = [8, 32], strides = [1, 1]} : vector<8x96xf32> to vector<8x32xf32>
    %341 = vector.extract_strided_slice %327 {offsets = [0, 64], sizes = [8, 32], strides = [1, 1]} : vector<8x96xf32> to vector<8x32xf32>
    %342 = arith.addf %341, %267 : vector<8x32xf32>
    %343 = arith.mulf %338, %342 : vector<8x32xf32>
    %344 = arith.addf %340, %343 : vector<8x32xf32>
    %345 = math.tanh %344 : vector<8x32xf32>
    %cst_117 = arith.constant 1.000000e+00 : f32
    %346 = vector.broadcast %cst_117 : f32 to vector<8x32xf32>
    %347 = arith.subf %346, %339 : vector<8x32xf32>
    %348 = arith.mulf %347, %345 : vector<8x32xf32>
    %349 = arith.mulf %339, %322 : vector<8x32xf32>
    %350 = arith.addf %348, %349 : vector<8x32xf32>
    %351 = arith.index_cast %326 : i32 to index
    %c0_118 = arith.constant 0 : index
    %352 = vector.load %arg22[%351, %c0_118] : memref<64x32xf32, #tpu.memory_space<vmem>>, vector<8x32xf32>
    tpu.vector_store %arg22[%351, %c0_118], %350 {strides = array<i32>} : memref<64x32xf32, #tpu.memory_space<vmem>>, vector<8x32xf32>,
    %c3_i32_119 = arith.constant 3 : i32
    %c8_i32_120 = arith.constant 8 : i32
    %353 = arith.muli %c3_i32_119, %c8_i32_120 : i32
    %354 = tpu.assume_multiple %353, 8 : i32
    %cst_121 = arith.constant dense<0.000000e+00> : vector<8x96xf32>
    %355 = tpu.matmul %350, %264, %cst_121 {dimension_numbers = #tpu.dot_dimension_numbers<[1], [0], [0], [1], [0, 0, 1, 1], [], []>} : vector<8x32xf32>, vector<32x96xf32>, vector<8x96xf32> -> vector<8x96xf32>
    %356 = arith.index_cast %354 : i32 to index
    %c0_122 = arith.constant 0 : index
    %357 = vector.load %arg21[%356, %c0_122] : memref<64x96xf32, #tpu.memory_space<vmem>>, vector<8x96xf32>
    %358 = vector.extract_strided_slice %357 {offsets = [0, 0], sizes = [8, 64], strides = [1, 1]} : vector<8x96xf32> to vector<8x64xf32>
    %359 = vector.extract_strided_slice %355 {offsets = [0, 0], sizes = [8, 64], strides = [1, 1]} : vector<8x96xf32> to vector<8x64xf32>
    %360 = arith.addf %358, %359 : vector<8x64xf32>
    %361 = arith.negf %360 : vector<8x64xf32>
    %362 = math.exp %361 : vector<8x64xf32>
    %cst_123 = arith.constant 1.000000e+00 : f32
    %363 = vector.broadcast %cst_123 : f32 to vector<8x64xf32>
    %364 = arith.addf %363, %362 : vector<8x64xf32>
    %365 = arith.divf %363, %364 : vector<8x64xf32>
    %366 = vector.extract_strided_slice %365 {offsets = [0, 0], sizes = [8, 32], strides = [1, 1]} : vector<8x64xf32> to vector<8x32xf32>
    %367 = vector.extract_strided_slice %365 {offsets = [0, 32], sizes = [8, 32], strides = [1, 1]} : vector<8x64xf32> to vector<8x32xf32>
    %368 = vector.extract_strided_slice %357 {offsets = [0, 64], sizes = [8, 32], strides = [1, 1]} : vector<8x96xf32> to vector<8x32xf32>
    %369 = vector.extract_strided_slice %355 {offsets = [0, 64], sizes = [8, 32], strides = [1, 1]} : vector<8x96xf32> to vector<8x32xf32>
    %370 = arith.addf %369, %267 : vector<8x32xf32>
    %371 = arith.mulf %366, %370 : vector<8x32xf32>
    %372 = arith.addf %368, %371 : vector<8x32xf32>
    %373 = math.tanh %372 : vector<8x32xf32>
    %cst_124 = arith.constant 1.000000e+00 : f32
    %374 = vector.broadcast %cst_124 : f32 to vector<8x32xf32>
    %375 = arith.subf %374, %367 : vector<8x32xf32>
    %376 = arith.mulf %375, %373 : vector<8x32xf32>
    %377 = arith.mulf %367, %350 : vector<8x32xf32>
    %378 = arith.addf %376, %377 : vector<8x32xf32>
    %379 = arith.index_cast %354 : i32 to index
    %c0_125 = arith.constant 0 : index
    %380 = vector.load %arg22[%379, %c0_125] : memref<64x32xf32, #tpu.memory_space<vmem>>, vector<8x32xf32>
    tpu.vector_store %arg22[%379, %c0_125], %378 {strides = array<i32>} : memref<64x32xf32, #tpu.memory_space<vmem>>, vector<8x32xf32>,
    %c4_i32_126 = arith.constant 4 : i32
    %c8_i32_127 = arith.constant 8 : i32
    %381 = arith.muli %c4_i32_126, %c8_i32_127 : i32
    %382 = tpu.assume_multiple %381, 8 : i32
    %cst_128 = arith.constant dense<0.000000e+00> : vector<8x96xf32>
    %383 = tpu.matmul %378, %264, %cst_128 {dimension_numbers = #tpu.dot_dimension_numbers<[1], [0], [0], [1], [0, 0, 1, 1], [], []>} : vector<8x32xf32>, vector<32x96xf32>, vector<8x96xf32> -> vector<8x96xf32>
    %384 = arith.index_cast %382 : i32 to index
    %c0_129 = arith.constant 0 : index
    %385 = vector.load %arg21[%384, %c0_129] : memref<64x96xf32, #tpu.memory_space<vmem>>, vector<8x96xf32>
    %386 = vector.extract_strided_slice %385 {offsets = [0, 0], sizes = [8, 64], strides = [1, 1]} : vector<8x96xf32> to vector<8x64xf32>
    %387 = vector.extract_strided_slice %383 {offsets = [0, 0], sizes = [8, 64], strides = [1, 1]} : vector<8x96xf32> to vector<8x64xf32>
    %388 = arith.addf %386, %387 : vector<8x64xf32>
    %389 = arith.negf %388 : vector<8x64xf32>
    %390 = math.exp %389 : vector<8x64xf32>
    %cst_130 = arith.constant 1.000000e+00 : f32
    %391 = vector.broadcast %cst_130 : f32 to vector<8x64xf32>
    %392 = arith.addf %391, %390 : vector<8x64xf32>
    %393 = arith.divf %391, %392 : vector<8x64xf32>
    %394 = vector.extract_strided_slice %393 {offsets = [0, 0], sizes = [8, 32], strides = [1, 1]} : vector<8x64xf32> to vector<8x32xf32>
    %395 = vector.extract_strided_slice %393 {offsets = [0, 32], sizes = [8, 32], strides = [1, 1]} : vector<8x64xf32> to vector<8x32xf32>
    %396 = vector.extract_strided_slice %385 {offsets = [0, 64], sizes = [8, 32], strides = [1, 1]} : vector<8x96xf32> to vector<8x32xf32>
    %397 = vector.extract_strided_slice %383 {offsets = [0, 64], sizes = [8, 32], strides = [1, 1]} : vector<8x96xf32> to vector<8x32xf32>
    %398 = arith.addf %397, %267 : vector<8x32xf32>
    %399 = arith.mulf %394, %398 : vector<8x32xf32>
    %400 = arith.addf %396, %399 : vector<8x32xf32>
    %401 = math.tanh %400 : vector<8x32xf32>
    %cst_131 = arith.constant 1.000000e+00 : f32
    %402 = vector.broadcast %cst_131 : f32 to vector<8x32xf32>
    %403 = arith.subf %402, %395 : vector<8x32xf32>
    %404 = arith.mulf %403, %401 : vector<8x32xf32>
    %405 = arith.mulf %395, %378 : vector<8x32xf32>
    %406 = arith.addf %404, %405 : vector<8x32xf32>
    %407 = arith.index_cast %382 : i32 to index
    %c0_132 = arith.constant 0 : index
    %408 = vector.load %arg22[%407, %c0_132] : memref<64x32xf32, #tpu.memory_space<vmem>>, vector<8x32xf32>
    tpu.vector_store %arg22[%407, %c0_132], %406 {strides = array<i32>} : memref<64x32xf32, #tpu.memory_space<vmem>>, vector<8x32xf32>,
    %c5_i32_133 = arith.constant 5 : i32
    %c8_i32_134 = arith.constant 8 : i32
    %409 = arith.muli %c5_i32_133, %c8_i32_134 : i32
    %410 = tpu.assume_multiple %409, 8 : i32
    %cst_135 = arith.constant dense<0.000000e+00> : vector<8x96xf32>
    %411 = tpu.matmul %406, %264, %cst_135 {dimension_numbers = #tpu.dot_dimension_numbers<[1], [0], [0], [1], [0, 0, 1, 1], [], []>} : vector<8x32xf32>, vector<32x96xf32>, vector<8x96xf32> -> vector<8x96xf32>
    %412 = arith.index_cast %410 : i32 to index
    %c0_136 = arith.constant 0 : index
    %413 = vector.load %arg21[%412, %c0_136] : memref<64x96xf32, #tpu.memory_space<vmem>>, vector<8x96xf32>
    %414 = vector.extract_strided_slice %413 {offsets = [0, 0], sizes = [8, 64], strides = [1, 1]} : vector<8x96xf32> to vector<8x64xf32>
    %415 = vector.extract_strided_slice %411 {offsets = [0, 0], sizes = [8, 64], strides = [1, 1]} : vector<8x96xf32> to vector<8x64xf32>
    %416 = arith.addf %414, %415 : vector<8x64xf32>
    %417 = arith.negf %416 : vector<8x64xf32>
    %418 = math.exp %417 : vector<8x64xf32>
    %cst_137 = arith.constant 1.000000e+00 : f32
    %419 = vector.broadcast %cst_137 : f32 to vector<8x64xf32>
    %420 = arith.addf %419, %418 : vector<8x64xf32>
    %421 = arith.divf %419, %420 : vector<8x64xf32>
    %422 = vector.extract_strided_slice %421 {offsets = [0, 0], sizes = [8, 32], strides = [1, 1]} : vector<8x64xf32> to vector<8x32xf32>
    %423 = vector.extract_strided_slice %421 {offsets = [0, 32], sizes = [8, 32], strides = [1, 1]} : vector<8x64xf32> to vector<8x32xf32>
    %424 = vector.extract_strided_slice %413 {offsets = [0, 64], sizes = [8, 32], strides = [1, 1]} : vector<8x96xf32> to vector<8x32xf32>
    %425 = vector.extract_strided_slice %411 {offsets = [0, 64], sizes = [8, 32], strides = [1, 1]} : vector<8x96xf32> to vector<8x32xf32>
    %426 = arith.addf %425, %267 : vector<8x32xf32>
    %427 = arith.mulf %422, %426 : vector<8x32xf32>
    %428 = arith.addf %424, %427 : vector<8x32xf32>
    %429 = math.tanh %428 : vector<8x32xf32>
    %cst_138 = arith.constant 1.000000e+00 : f32
    %430 = vector.broadcast %cst_138 : f32 to vector<8x32xf32>
    %431 = arith.subf %430, %423 : vector<8x32xf32>
    %432 = arith.mulf %431, %429 : vector<8x32xf32>
    %433 = arith.mulf %423, %406 : vector<8x32xf32>
    %434 = arith.addf %432, %433 : vector<8x32xf32>
    %435 = arith.index_cast %410 : i32 to index
    %c0_139 = arith.constant 0 : index
    %436 = vector.load %arg22[%435, %c0_139] : memref<64x32xf32, #tpu.memory_space<vmem>>, vector<8x32xf32>
    tpu.vector_store %arg22[%435, %c0_139], %434 {strides = array<i32>} : memref<64x32xf32, #tpu.memory_space<vmem>>, vector<8x32xf32>,
    %c6_i32_140 = arith.constant 6 : i32
    %c8_i32_141 = arith.constant 8 : i32
    %437 = arith.muli %c6_i32_140, %c8_i32_141 : i32
    %438 = tpu.assume_multiple %437, 8 : i32
    %cst_142 = arith.constant dense<0.000000e+00> : vector<8x96xf32>
    %439 = tpu.matmul %434, %264, %cst_142 {dimension_numbers = #tpu.dot_dimension_numbers<[1], [0], [0], [1], [0, 0, 1, 1], [], []>} : vector<8x32xf32>, vector<32x96xf32>, vector<8x96xf32> -> vector<8x96xf32>
    %440 = arith.index_cast %438 : i32 to index
    %c0_143 = arith.constant 0 : index
    %441 = vector.load %arg21[%440, %c0_143] : memref<64x96xf32, #tpu.memory_space<vmem>>, vector<8x96xf32>
    %442 = vector.extract_strided_slice %441 {offsets = [0, 0], sizes = [8, 64], strides = [1, 1]} : vector<8x96xf32> to vector<8x64xf32>
    %443 = vector.extract_strided_slice %439 {offsets = [0, 0], sizes = [8, 64], strides = [1, 1]} : vector<8x96xf32> to vector<8x64xf32>
    %444 = arith.addf %442, %443 : vector<8x64xf32>
    %445 = arith.negf %444 : vector<8x64xf32>
    %446 = math.exp %445 : vector<8x64xf32>
    %cst_144 = arith.constant 1.000000e+00 : f32
    %447 = vector.broadcast %cst_144 : f32 to vector<8x64xf32>
    %448 = arith.addf %447, %446 : vector<8x64xf32>
    %449 = arith.divf %447, %448 : vector<8x64xf32>
    %450 = vector.extract_strided_slice %449 {offsets = [0, 0], sizes = [8, 32], strides = [1, 1]} : vector<8x64xf32> to vector<8x32xf32>
    %451 = vector.extract_strided_slice %449 {offsets = [0, 32], sizes = [8, 32], strides = [1, 1]} : vector<8x64xf32> to vector<8x32xf32>
    %452 = vector.extract_strided_slice %441 {offsets = [0, 64], sizes = [8, 32], strides = [1, 1]} : vector<8x96xf32> to vector<8x32xf32>
    %453 = vector.extract_strided_slice %439 {offsets = [0, 64], sizes = [8, 32], strides = [1, 1]} : vector<8x96xf32> to vector<8x32xf32>
    %454 = arith.addf %453, %267 : vector<8x32xf32>
    %455 = arith.mulf %450, %454 : vector<8x32xf32>
    %456 = arith.addf %452, %455 : vector<8x32xf32>
    %457 = math.tanh %456 : vector<8x32xf32>
    %cst_145 = arith.constant 1.000000e+00 : f32
    %458 = vector.broadcast %cst_145 : f32 to vector<8x32xf32>
    %459 = arith.subf %458, %451 : vector<8x32xf32>
    %460 = arith.mulf %459, %457 : vector<8x32xf32>
    %461 = arith.mulf %451, %434 : vector<8x32xf32>
    %462 = arith.addf %460, %461 : vector<8x32xf32>
    %463 = arith.index_cast %438 : i32 to index
    %c0_146 = arith.constant 0 : index
    %464 = vector.load %arg22[%463, %c0_146] : memref<64x32xf32, #tpu.memory_space<vmem>>, vector<8x32xf32>
    tpu.vector_store %arg22[%463, %c0_146], %462 {strides = array<i32>} : memref<64x32xf32, #tpu.memory_space<vmem>>, vector<8x32xf32>,
    %c7_i32_147 = arith.constant 7 : i32
    %c8_i32_148 = arith.constant 8 : i32
    %465 = arith.muli %c7_i32_147, %c8_i32_148 : i32
    %466 = tpu.assume_multiple %465, 8 : i32
    %cst_149 = arith.constant dense<0.000000e+00> : vector<8x96xf32>
    %467 = tpu.matmul %462, %264, %cst_149 {dimension_numbers = #tpu.dot_dimension_numbers<[1], [0], [0], [1], [0, 0, 1, 1], [], []>} : vector<8x32xf32>, vector<32x96xf32>, vector<8x96xf32> -> vector<8x96xf32>
    %468 = arith.index_cast %466 : i32 to index
    %c0_150 = arith.constant 0 : index
    %469 = vector.load %arg21[%468, %c0_150] : memref<64x96xf32, #tpu.memory_space<vmem>>, vector<8x96xf32>
    %470 = vector.extract_strided_slice %469 {offsets = [0, 0], sizes = [8, 64], strides = [1, 1]} : vector<8x96xf32> to vector<8x64xf32>
    %471 = vector.extract_strided_slice %467 {offsets = [0, 0], sizes = [8, 64], strides = [1, 1]} : vector<8x96xf32> to vector<8x64xf32>
    %472 = arith.addf %470, %471 : vector<8x64xf32>
    %473 = arith.negf %472 : vector<8x64xf32>
    %474 = math.exp %473 : vector<8x64xf32>
    %cst_151 = arith.constant 1.000000e+00 : f32
    %475 = vector.broadcast %cst_151 : f32 to vector<8x64xf32>
    %476 = arith.addf %475, %474 : vector<8x64xf32>
    %477 = arith.divf %475, %476 : vector<8x64xf32>
    %478 = vector.extract_strided_slice %477 {offsets = [0, 0], sizes = [8, 32], strides = [1, 1]} : vector<8x64xf32> to vector<8x32xf32>
    %479 = vector.extract_strided_slice %477 {offsets = [0, 32], sizes = [8, 32], strides = [1, 1]} : vector<8x64xf32> to vector<8x32xf32>
    %480 = vector.extract_strided_slice %469 {offsets = [0, 64], sizes = [8, 32], strides = [1, 1]} : vector<8x96xf32> to vector<8x32xf32>
    %481 = vector.extract_strided_slice %467 {offsets = [0, 64], sizes = [8, 32], strides = [1, 1]} : vector<8x96xf32> to vector<8x32xf32>
    %482 = arith.addf %481, %267 : vector<8x32xf32>
    %483 = arith.mulf %478, %482 : vector<8x32xf32>
    %484 = arith.addf %480, %483 : vector<8x32xf32>
    %485 = math.tanh %484 : vector<8x32xf32>
    %cst_152 = arith.constant 1.000000e+00 : f32
    %486 = vector.broadcast %cst_152 : f32 to vector<8x32xf32>
    %487 = arith.subf %486, %479 : vector<8x32xf32>
    %488 = arith.mulf %487, %485 : vector<8x32xf32>
    %489 = arith.mulf %479, %462 : vector<8x32xf32>
    %490 = arith.addf %488, %489 : vector<8x32xf32>
    %491 = arith.index_cast %466 : i32 to index
    %c0_153 = arith.constant 0 : index
    %492 = vector.load %arg22[%491, %c0_153] : memref<64x32xf32, #tpu.memory_space<vmem>>, vector<8x32xf32>
    tpu.vector_store %arg22[%491, %c0_153], %490 {strides = array<i32>} : memref<64x32xf32, #tpu.memory_space<vmem>>, vector<8x32xf32>,
    %c8_i32_154 = arith.constant 8 : i32
    %c0_155 = arith.constant 0 : index
    %c0_156 = arith.constant 0 : index
    %493 = vector.load %arg24[%c0_155, %c0_156] : memref<8x32xf32, #tpu.memory_space<vmem>>, vector<8x32xf32>
    tpu.vector_store %arg24[%c0_155, %c0_156], %490 {strides = array<i32>} : memref<8x32xf32, #tpu.memory_space<vmem>>, vector<8x32xf32>,
    %c0_157 = arith.constant 0 : index
    %c0_158 = arith.constant 0 : index
    %494 = vector.load %arg22[%c0_157, %c0_158] : memref<64x32xf32, #tpu.memory_space<vmem>>, vector<64x32xf32>
    %c0_159 = arith.constant 0 : index
    %c0_160 = arith.constant 0 : index
    %495 = vector.load %arg16[%c0_159, %c0_160] : memref<32x4xf32, #tpu.memory_space<vmem>>, vector<32x4xf32>
    %cst_161 = arith.constant dense<0.000000e+00> : vector<64x4xf32>
    %496 = tpu.matmul %494, %495, %cst_161 {dimension_numbers = #tpu.dot_dimension_numbers<[1], [0], [0], [1], [0, 0, 1, 1], [], []>} : vector<64x32xf32>, vector<32x4xf32>, vector<64x4xf32> -> vector<64x4xf32>
    %c0_162 = arith.constant 0 : index
    %c0_163 = arith.constant 0 : index
    %497 = vector.load %arg17[%c0_162, %c0_163] : memref<1x4xf32, #tpu.memory_space<vmem>>, vector<1x4xf32>
    %498 = vector.broadcast %497 : vector<1x4xf32> to vector<64x4xf32>
    %499 = arith.addf %496, %498 : vector<64x4xf32>
    %cst_164 = arith.constant dense<0xFF800000> : vector<64xf32>
    %500 = vector.multi_reduction <maximumf>, %499, %cst_164 [1] : vector<64x4xf32> to vector<64xf32>
    %cst_165 = arith.constant 0xFF800000 : f32
    %501 = vector.broadcast %cst_165 : f32 to vector<64xf32>
    %502 = arith.maximumf %501, %500 : vector<64xf32>
    %503 = vector.shape_cast %502 : vector<64xf32> to vector<64x1xf32>
    %504 = vector.broadcast %503 : vector<64x1xf32> to vector<64x4xf32>
    %505 = arith.subf %499, %504 : vector<64x4xf32>
    %506 = math.exp %505 : vector<64x4xf32>
    %cst_166 = arith.constant dense<0.000000e+00> : vector<64xf32>
    %507 = vector.multi_reduction <add>, %506, %cst_166 [1] : vector<64x4xf32> to vector<64xf32>
    %508 = vector.shape_cast %507 : vector<64xf32> to vector<64x1xf32>
    %509 = vector.broadcast %508 : vector<64x1xf32> to vector<64x4xf32>
    %510 = arith.divf %506, %509 : vector<64x4xf32>
    %c0_167 = arith.constant 0 : index
    %c0_168 = arith.constant 0 : index
    %511 = vector.load %arg20[%c0_167, %c0_168] : memref<64x4xf32, #tpu.memory_space<vmem>>, vector<64x4xf32>
    tpu.vector_store %arg20[%c0_167, %c0_168], %510 {strides = array<i32>} : memref<64x4xf32, #tpu.memory_space<vmem>>, vector<64x4xf32>,
    return
  }
  func.func @transform_0(%arg0: i32, %arg1: i32) -> (i32, i32) {
    %c1_i32 = arith.constant 1 : i32
    %0 = arith.muli %arg0, %c1_i32 : i32
    %1 = arith.addi %0, %arg1 : i32
    %c0_i32 = arith.constant 0 : i32
    %c0_i32_0 = arith.constant 0 : i32
    return %1, %c0_i32 : i32, i32
  }
  func.func @transform_1(%arg0: i32, %arg1: i32) -> (i32, i32) {
    %c0_i32 = arith.constant 0 : i32
    %c0_i32_0 = arith.constant 0 : i32
    %c0_i32_1 = arith.constant 0 : i32
    return %c0_i32, %c0_i32_0 : i32, i32
  }
  func.func @transform_2(%arg0: i32, %arg1: i32) -> (i32, i32) {
    %c0_i32 = arith.constant 0 : i32
    %c0_i32_0 = arith.constant 0 : i32
    %c0_i32_1 = arith.constant 0 : i32
    return %c0_i32, %c0_i32_0 : i32, i32
  }
  func.func @transform_3(%arg0: i32, %arg1: i32) -> (i32, i32) {
    %c0_i32 = arith.constant 0 : i32
    %c0_i32_0 = arith.constant 0 : i32
    %c0_i32_1 = arith.constant 0 : i32
    return %c0_i32, %c0_i32_0 : i32, i32
  }
  func.func @transform_4(%arg0: i32, %arg1: i32) -> (i32, i32) {
    %c0_i32 = arith.constant 0 : i32
    %c0_i32_0 = arith.constant 0 : i32
    %c0_i32_1 = arith.constant 0 : i32
    return %c0_i32, %c0_i32_0 : i32, i32
  }
  func.func @transform_5(%arg0: i32, %arg1: i32) -> (i32, i32) {
    %c0_i32 = arith.constant 0 : i32
    %c0_i32_0 = arith.constant 0 : i32
    %c0_i32_1 = arith.constant 0 : i32
    return %c0_i32, %c0_i32_0 : i32, i32
  }
  func.func @transform_6(%arg0: i32, %arg1: i32) -> (i32, i32) {
    %c0_i32 = arith.constant 0 : i32
    %c0_i32_0 = arith.constant 0 : i32
    %c0_i32_1 = arith.constant 0 : i32
    return %c0_i32, %c0_i32_0 : i32, i32
  }
  func.func @transform_7(%arg0: i32, %arg1: i32) -> (i32, i32) {
    %c0_i32 = arith.constant 0 : i32
    %c0_i32_0 = arith.constant 0 : i32
    %c0_i32_1 = arith.constant 0 : i32
    return %c0_i32, %c0_i32_0 : i32, i32
  }
  func.func @transform_8(%arg0: i32, %arg1: i32) -> (i32, i32) {
    %c0_i32 = arith.constant 0 : i32
    %c0_i32_0 = arith.constant 0 : i32
    %c0_i32_1 = arith.constant 0 : i32
    return %c0_i32, %c0_i32_0 : i32, i32
  }
  func.func @transform_9(%arg0: i32, %arg1: i32) -> (i32, i32) {
    %c0_i32 = arith.constant 0 : i32
    %c0_i32_0 = arith.constant 0 : i32
    %c0_i32_1 = arith.constant 0 : i32
    return %c0_i32, %c0_i32_0 : i32, i32
  }
  func.func @transform_10(%arg0: i32, %arg1: i32) -> (i32, i32) {
    %c0_i32 = arith.constant 0 : i32
    %c0_i32_0 = arith.constant 0 : i32
    %c0_i32_1 = arith.constant 0 : i32
    return %c0_i32, %c0_i32_0 : i32, i32
  }
  func.func @transform_11(%arg0: i32, %arg1: i32) -> (i32, i32) {
    %c0_i32 = arith.constant 0 : i32
    %c0_i32_0 = arith.constant 0 : i32
    %c0_i32_1 = arith.constant 0 : i32
    return %c0_i32, %c0_i32_0 : i32, i32
  }
  func.func @transform_12(%arg0: i32, %arg1: i32) -> (i32, i32) {
    %c0_i32 = arith.constant 0 : i32
    %c0_i32_0 = arith.constant 0 : i32
    %c0_i32_1 = arith.constant 0 : i32
    return %c0_i32, %c0_i32_0 : i32, i32
  }
  func.func @transform_13(%arg0: i32, %arg1: i32) -> (i32, i32) {
    %c0_i32 = arith.constant 0 : i32
    %c0_i32_0 = arith.constant 0 : i32
    %c0_i32_1 = arith.constant 0 : i32
    return %c0_i32, %c0_i32_0 : i32, i32
  }
  func.func @transform_14(%arg0: i32, %arg1: i32) -> (i32, i32) {
    %c0_i32 = arith.constant 0 : i32
    %c0_i32_0 = arith.constant 0 : i32
    %c0_i32_1 = arith.constant 0 : i32
    return %c0_i32, %c0_i32_0 : i32, i32
  }
  func.func @transform_15(%arg0: i32, %arg1: i32) -> (i32, i32) {
    %c0_i32 = arith.constant 0 : i32
    %c0_i32_0 = arith.constant 0 : i32
    %c0_i32_1 = arith.constant 0 : i32
    return %c0_i32, %c0_i32_0 : i32, i32
  }
  func.func @transform_16(%arg0: i32, %arg1: i32) -> (i32, i32) {
    %c1_i32 = arith.constant 1 : i32
    %0 = arith.muli %arg0, %c1_i32 : i32
    %1 = arith.addi %0, %arg1 : i32
    %c0_i32 = arith.constant 0 : i32
    %c0_i32_0 = arith.constant 0 : i32
    return %1, %c0_i32 : i32, i32
  }
  func.func @transform_17(%arg0: i32, %arg1: i32) -> (i32, i32) {
    %c1_i32 = arith.constant 1 : i32
    %0 = arith.muli %arg0, %c1_i32 : i32
    %1 = arith.addi %0, %arg1 : i32
    %c0_i32 = arith.constant 0 : i32
    %c0_i32_0 = arith.constant 0 : i32
    return %1, %c0_i32 : i32, i32
  }
  func.func @transform_18(%arg0: i32, %arg1: i32) -> (i32, i32) {
    %c1_i32 = arith.constant 1 : i32
    %0 = arith.muli %arg0, %c1_i32 : i32
    %1 = arith.addi %0, %arg1 : i32
    %c0_i32 = arith.constant 0 : i32
    %c0_i32_0 = arith.constant 0 : i32
    return %1, %c0_i32 : i32, i32
  }
}

</mosaic_0001>

<bundles_post_ra>
// kernel: gru_forward.1
= control target key start
LH: loop header
LB: loop body
LE: loop exit
PB: predicated region body
PF: predicated region fallthrough
CT: control target
= control target key end

     0   :  { %vm168_vm0 = vcmask 1043456   ;;  %vm143_vm1 = vcmask 31744   ;;  %vm124_vm2 = vcmask 261120   ;;  %v3667_v3 = vmov 0.0|0.0   ;;  %s3672_s30 = smov 96   ;;  %s4389_s1 = inlined_call_operand.vmem [shape: f32[4,96], index: 1, kind: input, shape index: {}]   ;;  %s4390_s0 = inlined_call_operand.vmem [shape: f32[64,4], index: 0, kind: input, shape index: {}]   ;;  %s4391_s3 = inlined_call_operand.vmem [shape: f32[32,96], index: 3, kind: input, shape index: {}]   ;;  %s4392_s4 = inlined_call_operand.vmem [shape: f32[1,32], index: 4, kind: input, shape index: {}]   ;;  %s4393_s2 = inlined_call_operand.vmem [shape: f32[1,96], index: 2, kind: input, shape index: {}]   ;;  %s4394_s5 = inlined_call_operand.vmem [shape: f32[32,16], index: 5, kind: input, shape index: {}]   ;;  %s4395_s6 = inlined_call_operand.vmem [shape: f32[1,16], index: 6, kind: input, shape index: {}]   ;;  %s4396_s16 = inlined_call_operand.vmem [shape: f32[64,16], index: 16, kind: output, shape index: {0}]   ;;  %s4397_s7 = inlined_call_operand.vmem [shape: f32[16,2], index: 7, kind: input, shape index: {}]   ;;  %s4398_s8 = inlined_call_operand.vmem [shape: f32[1,2], index: 8, kind: input, shape index: {}]   ;;  %s4399_s17 = inlined_call_operand.vmem [shape: f32[64,2], index: 17, kind: output, shape index: {1}]   ;;  %s4400_s10 = inlined_call_operand.vmem [shape: f32[16,96], index: 10, kind: input, shape index: {}]   ;;  %s4401_s12 = inlined_call_operand.vmem [shape: f32[32,96], index: 12, kind: input, shape index: {}]   ;;  %s4402_s9 = inlined_call_operand.vmem [shape: f32[4,96], index: 9, kind: input, shape index: {}]   ;;  %s4403_s13 = inlined_call_operand.vmem [shape: f32[1,32], index: 13, kind: input, shape index: {}]   ;;  %s4404_s11 = inlined_call_operand.vmem [shape: f32[1,96], index: 11, kind: input, shape index: {}]   ;;  %s4405_s14 = inlined_call_operand.vmem [shape: f32[32,4], index: 14, kind: input, shape index: {}]   ;;  %s4406_s15 = inlined_call_operand.vmem [shape: f32[1,4], index: 15, kind: input, shape index: {}]   ;;  %s4407_s18 = inlined_call_operand.vmem [shape: f32[64,4], index: 18, kind: output, shape index: {2}]  }
   0x1   :  { %4410 = sst [smem:[#allocation6_spill]] %s4389_s1  ;;  %3417 = vmatprep.subr.bf16.mxu0 %v3667_v3  ;;  %v3668_v7 = vmov 0.0   ;;  %vm3669_vm3 = vmmov 0   ;;  %v2908_v13 = vld [vmem:[%s4392_s4] ss:$0 sm:$0xff]  ;;  %vm277_vm4 = vcmask 785408  }
   0x2   :  { %4411 = sst [smem:[#allocation7_spill]] %s4390_s0  ;;  %s4413_s29 = sld [smem:[#allocation6_spill]]  ;;  %125 = vst.msk [vmem:[#allocation4] sm:$0xff] %vm124_vm2, %v3668_v7  ;;  %126 = vst.msk [vmem:[#allocation5] sm:$0xff] %vm124_vm2, %v3668_v7  ;;  %3173 = vmatprep.mubr.msk.f32.mxu0 %vm3669_vm3, %v3668_v7  ;;  %v2898_v19 = vld [vmem:[%s4393_s2] ss:$0 sm:$0xff] }
   0x3   :  { %4412 = sst [smem:[#allocation8_spill]] %s4391_s3  ;;  %s4414_s19 = sld [smem:[#allocation7_spill]]  ;;  %vm1316_vm5 = vcmask 130048   ;;  %vm1463_vm6 = vcmask 15360  }
   0x4   :  { %s4415_s3 = sld [smem:[#allocation8_spill]]  ;;  %s3671_s2 = smov 32  }
   0x8   :  { %v135_v0 = vld [vmem:[%s4413_s29] sm:$0xf] }
   0x9   :  { %v3774_v1 = vld [vmem:[%s4414_s19] sm:$0xff]  ;;  %v3779_v2 = vld [vmem:[%s4414_s19 + $0x8] sm:$0xff]  ;;  %3129 = vmatprep.subr.msk.mxu1 %vm168_vm0, %v135_v0  ;;  %v3794_v6 = vld [vmem:[%s4414_s19 + $0x10] sm:$0xff] }
   0xa   :  { %3131 = vmatprep.mubr.msk.f32.mxu1 %vm143_vm1, %v3774_v1  ;;  %v286_v4 = vld [vmem:[%s4415_s3] sm:$0xff]  ;;  %v287_v5 = vld [vmem:[%s4415_s3 + $0x8] sm:$0xff]  ;;  %3130 = vmatpush3.msk.msra.mxu1 %vm168_vm0, %v135_v0  ;;  %v288_v9 = vld [vmem:[%s4415_s3 + $0x10] sm:$0xff] }
   0xb   :  { %v3801_v8 = vpack.c.bf16 %v287_v5, %v286_v4  ;;  %3132 = vmatmul.mubr.msk.f32.vlgmr.msra.gmra.mrb[0].mxu1 %vm143_vm1, %v3779_v2  ;;  %3405 = vmatprep.subr.bf16.mxu1 %v3667_v3  ;;  %v289_v10 = vld [vmem:[%s4415_s3 + $0x18] sm:$0xff]  ;;  %v3830_v14 = vld [vmem:[%s4414_s19 + $0x20] sm:$0xff]  ;;  %s3670_s3 = smov 64   ;;  %v3843_v15 = vld [vmem:[%s4414_s19 + $0x28] sm:$0xff] }
   0xc   :  { %3134 = vmatprep.mubr.msk.f32.mxu1 %vm143_vm1, %v3794_v6  ;;  %v3820_v11 = vld [vmem:[%s4414_s19 + $0x18] sm:$0xff]  ;;  %v3822_v12 = vpack.c.bf16 %v289_v10, %v288_v9  ;;  %379 = vrot.lane.b32.xlu0 %v2908_v13, %s3670_s3  ;;  %v3849_v16 = vld [vmem:[%s4414_s19 + $0x30] sm:$0xff]  ;;  %v296_v18 = vld [vmem:[#allocation4] sm:$0xff] }
   0xd   :  { %3407 = vmatpush3.bf16.msra.mxu1 %v3801_v8  ;;  %3419 = vmatpush3.bf16.msra.mxu0 %v3801_v8  ;;  %v3861_v17 = vld [vmem:[%s4414_s19 + $0x38] sm:$0xff] }
   0xe   :  { %3408 = vmatprep.subr.bf16.mxu1 %v3667_v3  ;;  %3420 = vmatprep.subr.bf16.mxu0 %v3667_v3 }
   0xf   :  { %3135 = vmatmul.mubr.msk.f32.gmra.mrb[2].mxu1 %vm143_vm1, %v3820_v11 }
  0x10   :  { %3137 = vmatprep.mubr.msk.f32.mxu1 %vm143_vm1, %v3830_v14 }
  0x11   :  { %3410 = vmatpush3.bf16.msra.mxu1 %v3822_v12  ;;  %3422 = vmatpush3.bf16.msra.mxu0 %v3822_v12 }
  0x12   :  { %3411 = vmatprep.subr.bf16.mxu1 %v3667_v3  ;;  %3429 = vmatprep.subr.bf16.mxu0 %v3667_v3 }
  0x13   :  { %3138 = vmatmul.mubr.msk.f32.gmra.mrb[4].mxu1 %vm143_vm1, %v3843_v15 }
  0x14   :  { %3140 = vmatprep.mubr.msk.f32.mxu1 %vm143_vm1, %v3849_v16 }
  0x17   :  { %3141 = vmatmul.mubr.msk.f32.gmra.mrb[6].mxu1 %vm143_vm1, %v3861_v17 }
  0x18   :  { %3151 = vmatprep.mubr.msk.f32.mxu1 %vm3669_vm3, %v3668_v7 }
  0x1b   :  { %3152 = vmatmul.mubr.msk.f32.vlgmr.msra.gmra.mrb[8].mxu1 %vm124_vm2, %v296_v18 }
  0x1c   :  { %3413 = vmatpush3.bf16.msra.mxu1 %v3801_v8  ;;  %3162 = vmatprep.mubr.msk.f32.mxu1 %vm3669_vm3, %v3668_v7 }
  0x1d   :  { %3414 = vmatprep.subr.bf16.mxu1 %v3667_v3 }
  0x20   :  { %3416 = vmatpush3.bf16.msra.mxu1 %v3822_v12 }
  0x21   :  { %3423 = vmatprep.subr.bf16.mxu1 %v3667_v3 }
  0x7e   :  { %v3883_v36 = vpop.permute.xlu0 %379 }
  0xde   :  { %v3133_v20 = vpop.f32.mrb[0].mxu1 }
  0xdf   :  { %v244_v21 = vadd.f32 %v3133_v20, %v2898_v19  ;;  %v238_v22 = vpop.f32.mrb[1].mxu1 }
  0xe0   :  { %v239_v23 = vadd.f32 %v2898_v19, %v238_v22 }
  0xe1   :  { %279 = vst.msk [vmem:[#allocation2 + $0x8] sm:$0xff] %vm277_vm4, %v244_v21 }
  0xe2   :  { %278 = vst.msk [vmem:[#allocation2] sm:$0xff] %vm277_vm4, %v239_v23  ;;  %v3136_v24 = vpop.f32.mrb[2].mxu1 }
  0xe3   :  { %v254_v25 = vadd.f32 %v3136_v24, %v2898_v19  ;;  %v248_v26 = vpop.f32.mrb[3].mxu1 }
  0xe4   :  { %v249_v27 = vadd.f32 %v2898_v19, %v248_v26 }
  0xe5   :  { %281 = vst.msk [vmem:[#allocation2 + $0x18] sm:$0xff] %vm277_vm4, %v254_v25 }
  0xe6   :  { %280 = vst.msk [vmem:[#allocation2 + $0x10] sm:$0xff] %vm277_vm4, %v249_v27  ;;  %v3139_v28 = vpop.f32.mrb[4].mxu1 }
  0xe7   :  { %v264_v29 = vadd.f32 %v3139_v28, %v2898_v19  ;;  %v258_v30 = vpop.f32.mrb[5].mxu1 }
  0xe8   :  { %v259_v31 = vadd.f32 %v2898_v19, %v258_v30  ;;  %v483_v61 = vld [vmem:[#allocation2 + $0x8] sm:$0xff] }
  0xe9   :  { %283 = vst.msk [vmem:[#allocation2 + $0x28] sm:$0xff] %vm277_vm4, %v264_v29  ;;  %v371_v40 = vld [vmem:[#allocation2] sm:$0xff] }
  0xea   :  { %282 = vst.msk [vmem:[#allocation2 + $0x20] sm:$0xff] %vm277_vm4, %v259_v31  ;;  %v3142_v32 = vpop.f32.mrb[6].mxu1 }
  0xeb   :  { %v274_v33 = vadd.f32 %v3142_v32, %v2898_v19  ;;  %v268_v34 = vpop.f32.mrb[7].mxu1 }
  0xec   :  { %v269_v35 = vadd.f32 %v2898_v19, %v268_v34 }
  0xed   :  { %285 = vst.msk [vmem:[#allocation2 + $0x38] sm:$0xff] %vm277_vm4, %v274_v33  ;;  %v590_v29 = vld [vmem:[#allocation2 + $0x10] sm:$0xff] }
  0xee   :  { %284 = vst.msk [vmem:[#allocation2 + $0x30] sm:$0xff] %vm277_vm4, %v269_v35  ;;  %v367_v37 = vpop.f32.mrb[8].mxu1 }
  0xef   :  { %v382_v38 = vadd.f32 %v3883_v36, %v367_v37  ;;  %v3153_v39 = vpop.f32.mrb[9].mxu1  ;;  %v372_v41 = vadd.f32 %v371_v40, %v367_v37 }
  0xf1   :  { %384 = vrot.lane.b32.xlu0 %v382_v38, %s3670_s3  ;;  %v2910_v42 = vmul.f32 -1.442695, %v372_v41 }
  0xf3   :  { %3539 = vpow2.f32 %v2910_v42 }
  0xf5   :  { %400 = vrot.lane.b32.xlu0 %v296_v18, %s3671_s2 }
  0xfd   :  { %v3540_v43 = vpop.eup %3539 }
  0xfe   :  { %v376_v44 = vadd.f32 1.0, %v3540_v43 }
 0x100   :  { %3541 = vrcp.f32 %v376_v44 }
 0x10a   :  { %v3542_v45 = vpop.eup %3541 }
 0x10b   :  { %v394_v52 = vsub.f32 1.0, %v3542_v45 }
 0x163   :  { %v385_v46 = vpop.permute.xlu0 %384 }
 0x164   :  { %v387_v47 = vmul.f32 %v3542_v45, %v385_v46 }
 0x166   :  { %389 = vrot.lane.b32.xlu1 %v387_v47, %s3670_s3 }
 0x167   :  { %v401_v51 = vpop.permute.xlu0 %400 }
 0x168   :  { %v403_v54 = vmul.f32 %v3542_v45, %v401_v51 }
 0x1d8   :  { %v390_v48 = vpop.permute.xlu1 %389 }
 0x1d9   :  { %v392_v49 = vadd.f32 %v390_v48, %v371_v40 }
 0x1db   :  { %3543 = vtanh.f32 %v392_v49 }
 0x1e5   :  { %v3544_v50 = vpop.eup %3543 }
 0x1e6   :  { %396 = vrot.lane.b32.xlu1 %v3544_v50, %s3672_s30  ;;  %v697_v50 = vld [vmem:[#allocation2 + $0x18] sm:$0xff] }
 0x258   :  { %v397_v53 = vpop.permute.xlu1 %396 }
 0x259   :  { %v399_v55 = vmul.f32 %v397_v53, %v394_v52 }
 0x25b   :  { %v404_v56 = vadd.f32 %v403_v54, %v399_v55 }
 0x25d   :  { %406 = vrot.lane.b32.xlu1 %v404_v56, %s3672_s30 }
 0x2cf   :  { %v407_v57 = vpop.permute.xlu1 %406 }
 0x2d0   :  { %409 = vst.msk [vmem:[#allocation3] sm:$0xff] %vm124_vm2, %v407_v57  ;;  %3163 = vmatmul.mubr.msk.f32.vlgmr.msra.gmra.mrb[10].mxu1 %vm124_vm2, %v407_v57 }
 0x2d1   :  { %3425 = vmatpush3.bf16.msra.mxu1 %v3801_v8  ;;  %3184 = vmatprep.mubr.msk.f32.mxu1 %vm3669_vm3, %v3668_v7 }
 0x2d2   :  { %3426 = vmatprep.subr.bf16.mxu1 %v3667_v3 }
 0x2d5   :  { %3428 = vmatpush3.bf16.msra.mxu1 %v3822_v12 }
 0x2d6   :  { %3435 = vmatprep.subr.bf16.mxu1 %v3667_v3 }
 0x3a3   :  { %v478_v58 = vpop.f32.mrb[10].mxu1 }
 0x3a4   :  { %v491_v59 = vadd.f32 %v478_v58, %v3883_v36  ;;  %v3164_v60 = vpop.f32.mrb[11].mxu1  ;;  %v484_v62 = vadd.f32 %v483_v61, %v478_v58 }
 0x3a6   :  { %493 = vrot.lane.b32.xlu0 %v491_v59, %s3670_s3  ;;  %v2912_v63 = vmul.f32 -1.442695, %v484_v62 }
 0x3a8   :  { %3545 = vpow2.f32 %v2912_v63 }
 0x3b2   :  { %v3546_v0 = vpop.eup %3545 }
 0x3b3   :  { %v488_v4 = vadd.f32 1.0, %v3546_v0 }
 0x3b5   :  { %3547 = vrcp.f32 %v488_v4 }
 0x3bf   :  { %v3548_v5 = vpop.eup %3547 }
 0x3c0   :  { %v503_v20 = vsub.f32 1.0, %v3548_v5  ;;  %v509_v22 = vmul.f32 %v3548_v5, %v404_v56 }
 0x418   :  { %v494_v9 = vpop.permute.xlu0 %493 }
 0x419   :  { %v496_v10 = vmul.f32 %v3548_v5, %v494_v9 }
 0x41b   :  { %498 = vrot.lane.b32.xlu1 %v496_v10, %s3670_s3 }
 0x48d   :  { %v499_v13 = vpop.permute.xlu1 %498 }
 0x48e   :  { %v501_v18 = vadd.f32 %v499_v13, %v483_v61 }
 0x490   :  { %3549 = vtanh.f32 %v501_v18  ;;  %v804_v18 = vld [vmem:[#allocation2 + $0x20] sm:$0xff] }
 0x49a   :  { %v3550_v19 = vpop.eup %3549 }
 0x49b   :  { %505 = vrot.lane.b32.xlu0 %v3550_v19, %s3672_s30 }
 0x50d   :  { %v506_v21 = vpop.permute.xlu0 %505 }
 0x50e   :  { %v508_v23 = vmul.f32 %v506_v21, %v503_v20 }
 0x510   :  { %v510_v24 = vadd.f32 %v509_v22, %v508_v23 }
 0x512   :  { %512 = vrot.lane.b32.xlu1 %v510_v24, %s3672_s30 }
 0x584   :  { %v513_v25 = vpop.permute.xlu1 %512 }
 0x585   :  { %516 = vst.msk [vmem:[#allocation3 + $0x8] sm:$0xff] %vm124_vm2, %v513_v25  ;;  %3174 = vmatmul.mubr.msk.f32.vlgmr.msra.gmra.mrb[0].mxu0 %vm124_vm2, %v513_v25 }
 0x586   :  { %3431 = vmatpush3.bf16.msra.mxu0 %v3801_v8  ;;  %3195 = vmatprep.mubr.msk.f32.mxu0 %vm3669_vm3, %v3668_v7 }
 0x587   :  { %3432 = vmatprep.subr.bf16.mxu0 %v3667_v3 }
 0x58a   :  { %3434 = vmatpush3.bf16.msra.mxu0 %v3822_v12 }
 0x58b   :  { %3441 = vmatprep.subr.bf16.mxu0 %v3667_v3 }
 0x658   :  { %v585_v26 = vpop.f32.mrb[0].mxu0 }
 0x659   :  { %v598_v27 = vadd.f32 %v585_v26, %v3883_v36  ;;  %v3175_v28 = vpop.f32.mrb[1].mxu0  ;;  %v591_v30 = vadd.f32 %v590_v29, %v585_v26 }
 0x65b   :  { %600 = vrot.lane.b32.xlu0 %v598_v27, %s3670_s3  ;;  %v2914_v31 = vmul.f32 -1.442695, %v591_v30 }
 0x65d   :  { %3551 = vpow2.f32 %v2914_v31 }
 0x667   :  { %v3552_v32 = vpop.eup %3551 }
 0x668   :  { %v595_v33 = vadd.f32 1.0, %v3552_v32 }
 0x66a   :  { %3553 = vrcp.f32 %v595_v33 }
 0x674   :  { %v3554_v34 = vpop.eup %3553 }
 0x675   :  { %v610_v41 = vsub.f32 1.0, %v3554_v34  ;;  %v616_v43 = vmul.f32 %v3554_v34, %v510_v24 }
 0x6cd   :  { %v601_v35 = vpop.permute.xlu0 %600 }
 0x6ce   :  { %v603_v37 = vmul.f32 %v3554_v34, %v601_v35 }
 0x6d0   :  { %605 = vrot.lane.b32.xlu1 %v603_v37, %s3670_s3 }
 0x742   :  { %v606_v38 = vpop.permute.xlu1 %605 }
 0x743   :  { %v608_v39 = vadd.f32 %v606_v38, %v590_v29 }
 0x745   :  { %3555 = vtanh.f32 %v608_v39  ;;  %v911_v39 = vld [vmem:[#allocation2 + $0x28] sm:$0xff] }
 0x74f   :  { %v3556_v40 = vpop.eup %3555 }
 0x750   :  { %612 = vrot.lane.b32.xlu0 %v3556_v40, %s3672_s30 }
 0x7c2   :  { %v613_v42 = vpop.permute.xlu0 %612 }
 0x7c3   :  { %v615_v44 = vmul.f32 %v613_v42, %v610_v41 }
 0x7c5   :  { %v617_v45 = vadd.f32 %v616_v43, %v615_v44 }
 0x7c7   :  { %619 = vrot.lane.b32.xlu1 %v617_v45, %s3672_s30 }
 0x839   :  { %v620_v46 = vpop.permute.xlu1 %619 }
 0x83a   :  { %623 = vst.msk [vmem:[#allocation3 + $0x10] sm:$0xff] %vm124_vm2, %v620_v46  ;;  %3185 = vmatmul.mubr.msk.f32.vlgmr.msra.gmra.mrb[12].mxu1 %vm124_vm2, %v620_v46 }
 0x83b   :  { %3437 = vmatpush3.bf16.msra.mxu1 %v3801_v8  ;;  %3206 = vmatprep.mubr.msk.f32.mxu1 %vm3669_vm3, %v3668_v7 }
 0x83c   :  { %3438 = vmatprep.subr.bf16.mxu1 %v3667_v3 }
 0x83f   :  { %3440 = vmatpush3.bf16.msra.mxu1 %v3822_v12 }
 0x840   :  { %3447 = vmatprep.subr.bf16.mxu1 %v3667_v3 }
 0x90d   :  { %v692_v47 = vpop.f32.mrb[12].mxu1 }
 0x90e   :  { %v705_v48 = vadd.f32 %v692_v47, %v3883_v36  ;;  %v3186_v49 = vpop.f32.mrb[13].mxu1  ;;  %v698_v51 = vadd.f32 %v697_v50, %v692_v47  ;;  %v1168_v47 = vld [vmem:[%s4394_s5] sm:$0xff] }
 0x910   :  { %707 = vrot.lane.b32.xlu0 %v705_v48, %s3670_s3  ;;  %v2916_v52 = vmul.f32 -1.442695, %v698_v51  ;;  %v1169_v48 = vld [vmem:[%s4394_s5 + $0x8] sm:$0xff] }
 0x911   :  { %v3453_v49 = vpack.c.bf16 %v1169_v48, %v1168_v47  ;;  %v1326_v47 = vld [vmem:[%s4397_s7 + $0x8] sm:$0xff] }
 0x912   :  { %3557 = vpow2.f32 %v2916_v52 }
 0x91c   :  { %v3558_v53 = vpop.eup %3557 }
 0x91d   :  { %v702_v54 = vadd.f32 1.0, %v3558_v53 }
 0x91f   :  { %3559 = vrcp.f32 %v702_v54 }
 0x929   :  { %v3560_v55 = vpop.eup %3559 }
 0x92a   :  { %v717_v61 = vsub.f32 1.0, %v3560_v55  ;;  %v723_v63 = vmul.f32 %v3560_v55, %v617_v45 }
 0x982   :  { %v708_v56 = vpop.permute.xlu0 %707 }
 0x983   :  { %v710_v57 = vmul.f32 %v3560_v55, %v708_v56  ;;  %v1170_v56 = vld [vmem:[%s4394_s5 + $0x10] sm:$0xff] }
 0x985   :  { %712 = vrot.lane.b32.xlu1 %v710_v57, %s3670_s3  ;;  %v1171_v57 = vld [vmem:[%s4394_s5 + $0x18] sm:$0xff] }
 0x9f7   :  { %v713_v58 = vpop.permute.xlu1 %712 }
 0x9f8   :  { %v715_v59 = vadd.f32 %v713_v58, %v697_v50  ;;  %v3457_v58 = vpack.c.bf16 %v1171_v57, %v1170_v56 }
 0x9fa   :  { %3561 = vtanh.f32 %v715_v59 }
 0xa04   :  { %v3562_v60 = vpop.eup %3561 }
 0xa05   :  { %719 = vrot.lane.b32.xlu0 %v3562_v60, %s3672_s30  ;;  %v1160_v60 = vld [vmem:[#allocation3] sm:$0xff] }
 0xa77   :  { %v720_v62 = vpop.permute.xlu0 %719 }
 0xa78   :  { %v722_v0 = vmul.f32 %v720_v62, %v717_v61  ;;  %v1161_v61 = vld [vmem:[#allocation3 + $0x8] sm:$0xff]  ;;  %v1162_v62 = vld [vmem:[#allocation3 + $0x10] sm:$0xff] }
 0xa7a   :  { %v724_v4 = vadd.f32 %v723_v63, %v722_v0 }
 0xa7c   :  { %726 = vrot.lane.b32.xlu1 %v724_v4, %s3672_s30 }
 0xaee   :  { %v727_v5 = vpop.permute.xlu1 %726 }
 0xaef   :  { %730 = vst.msk [vmem:[#allocation3 + $0x18] sm:$0xff] %vm124_vm2, %v727_v5  ;;  %3196 = vmatmul.mubr.msk.f32.vlgmr.msra.gmra.mrb[2].mxu0 %vm124_vm2, %v727_v5 }
 0xaf0   :  { %3443 = vmatpush3.bf16.msra.mxu0 %v3801_v8  ;;  %3217 = vmatprep.mubr.msk.f32.mxu0 %vm3669_vm3, %v3668_v7 }
 0xaf1   :  { %3444 = vmatprep.subr.bf16.mxu0 %v3667_v3 }
 0xaf4   :  { %3446 = vmatpush3.bf16.msra.mxu0 %v3822_v12 }
 0xaf5   :  { %3454 = vmatprep.subr.bf16.mxu0 %v3453_v49 }
 0xaf6   :  { %v1163_v63 = vld [vmem:[#allocation3 + $0x18] sm:$0xff] }
 0xbc2   :  { %v799_v9 = vpop.f32.mrb[2].mxu0 }
 0xbc3   :  { %v812_v10 = vadd.f32 %v799_v9, %v3883_v36  ;;  %v3197_v13 = vpop.f32.mrb[3].mxu0  ;;  %v805_v19 = vadd.f32 %v804_v18, %v799_v9 }
 0xbc4   :  { %v3984_v13 = vld [vmem:[%s4395_s6] ss:$0 sm:$0xff] }
 0xbc5   :  { %814 = vrot.lane.b32.xlu0 %v812_v10, %s3670_s3  ;;  %v2918_v20 = vmul.f32 -1.442695, %v805_v19 }
 0xbc7   :  { %3563 = vpow2.f32 %v2918_v20 }
 0xbd1   :  { %v3564_v21 = vpop.eup %3563 }
 0xbd2   :  { %v809_v22 = vadd.f32 1.0, %v3564_v21 }
 0xbd4   :  { %3565 = vrcp.f32 %v809_v22 }
 0xbde   :  { %v3566_v23 = vpop.eup %3565 }
 0xbdf   :  { %v824_v29 = vsub.f32 1.0, %v3566_v23  ;;  %v830_v31 = vmul.f32 %v3566_v23, %v724_v4 }
 0xc37   :  { %v815_v24 = vpop.permute.xlu0 %814 }
 0xc38   :  { %v817_v25 = vmul.f32 %v3566_v23, %v815_v24 }
 0xc3a   :  { %819 = vrot.lane.b32.xlu1 %v817_v25, %s3670_s3 }
 0xcac   :  { %v820_v26 = vpop.permute.xlu1 %819 }
 0xcad   :  { %v822_v27 = vadd.f32 %v820_v26, %v804_v18 }
 0xcaf   :  { %3567 = vtanh.f32 %v822_v27 }
 0xcb9   :  { %v3568_v28 = vpop.eup %3567 }
 0xcba   :  { %826 = vrot.lane.b32.xlu0 %v3568_v28, %s3672_s30 }
 0xd2c   :  { %v827_v30 = vpop.permute.xlu0 %826 }
 0xd2d   :  { %v829_v32 = vmul.f32 %v827_v30, %v824_v29 }
 0xd2f   :  { %v831_v33 = vadd.f32 %v830_v31, %v829_v32 }
 0xd31   :  { %833 = vrot.lane.b32.xlu1 %v831_v33, %s3672_s30 }
 0xda3   :  { %v834_v34 = vpop.permute.xlu1 %833 }
 0xda4   :  { %837 = vst.msk [vmem:[#allocation3 + $0x20] sm:$0xff] %vm124_vm2, %v834_v34  ;;  %3207 = vmatmul.mubr.msk.f32.vlgmr.msra.gmra.mrb[14].mxu1 %vm124_vm2, %v834_v34 }
 0xda5   :  { %3449 = vmatpush3.bf16.msra.mxu1 %v3801_v8  ;;  %3228 = vmatprep.mubr.msk.f32.mxu1 %vm3669_vm3, %v3668_v7 }
 0xda6   :  { %3450 = vmatprep.subr.bf16.mxu1 %v3667_v3 }
 0xda9   :  { %3452 = vmatpush3.bf16.msra.mxu1 %v3822_v12 }
 0xdab   :  { %v1164_v0 = vld [vmem:[#allocation3 + $0x20] sm:$0xff] }
 0xe77   :  { %v906_v35 = vpop.f32.mrb[14].mxu1 }
 0xe78   :  { %v919_v37 = vadd.f32 %v906_v35, %v3883_v36  ;;  %v3208_v38 = vpop.f32.mrb[15].mxu1  ;;  %v912_v40 = vadd.f32 %v911_v39, %v906_v35 }
 0xe7a   :  { %921 = vrot.lane.b32.xlu0 %v919_v37, %s3670_s3  ;;  %v2920_v41 = vmul.f32 -1.442695, %v912_v40  ;;  %v1018_v37 = vld [vmem:[#allocation2 + $0x30] sm:$0xff] }
 0xe7c   :  { %3569 = vpow2.f32 %v2920_v41 }
 0xe86   :  { %v3570_v42 = vpop.eup %3569 }
 0xe87   :  { %v916_v43 = vadd.f32 1.0, %v3570_v42 }
 0xe89   :  { %3571 = vrcp.f32 %v916_v43 }
 0xe93   :  { %v3572_v8 = vpop.eup %3571 }
 0xe94   :  { %v931_v51 = vsub.f32 1.0, %v3572_v8  ;;  %v937_v53 = vmul.f32 %v3572_v8, %v831_v33 }
 0xeec   :  { %v922_v44 = vpop.permute.xlu0 %921 }
 0xeed   :  { %v924_v45 = vmul.f32 %v3572_v8, %v922_v44 }
 0xeef   :  { %926 = vrot.lane.b32.xlu1 %v924_v45, %s3670_s3 }
 0xf61   :  { %v927_v46 = vpop.permute.xlu1 %926 }
 0xf62   :  { %v929_v12 = vadd.f32 %v927_v46, %v911_v39 }
 0xf64   :  { %3573 = vtanh.f32 %v929_v12  ;;  %v1325_v12 = vld [vmem:[%s4397_s7] sm:$0xff] }
 0xf65   :  { %v3461_v48 = vpack.c.bf16 %v1326_v47, %v1325_v12 }
 0xf67   :  { %3462 = vmatprep.subr.bf16.mxu1 %v3461_v48 }
 0xf6e   :  { %v3574_v50 = vpop.eup %3573 }
 0xf6f   :  { %933 = vrot.lane.b32.xlu0 %v3574_v50, %s3672_s30 }
 0xfe1   :  { %v934_v52 = vpop.permute.xlu0 %933 }
 0xfe2   :  { %v936_v54 = vmul.f32 %v934_v52, %v931_v51 }
 0xfe4   :  { %v3961_v55 = vadd.f32 %v937_v53, %v936_v54 }
 0xfe6   :  { %940 = vrot.lane.b32.xlu1 %v3961_v55, %s3672_s30 }
0x1058   :  { %v941_v59 = vpop.permute.xlu1 %940 }
0x1059   :  { %944 = vst.msk [vmem:[#allocation3 + $0x28] sm:$0xff] %vm124_vm2, %v941_v59  ;;  %3218 = vmatmul.mubr.msk.f32.vlgmr.msra.gmra.mrb[4].mxu0 %vm124_vm2, %v941_v59  ;;  %v4067_v59 = vld [vmem:[%s4398_s8] ss:$0 sm:$0xff] }
0x105a   :  { %3456 = vmatpush3.bf16.msra.mxu0 %v3453_v49  ;;  %3239 = vmatprep.mubr.msk.f32.mxu0 %vm124_vm2, %v1160_v60 }
0x105b   :  { %3458 = vmatprep.subr.bf16.mxu0 %v3457_v58 }
0x105e   :  { %3460 = vmatpush3.bf16.msra.mxu0 %v3457_v58 }
0x1060   :  { %v1165_v4 = vld [vmem:[#allocation3 + $0x28] sm:$0xff] }
0x1061   :  { %3240 = vmatmul.mubr.msk.f32.vlgmr.msra.gmra.mrb[6].mxu0 %vm124_vm2, %v1161_v61 }
0x1062   :  { %3242 = vmatprep.mubr.msk.f32.mxu0 %vm124_vm2, %v1162_v62 }
0x1065   :  { %3243 = vmatmul.mubr.msk.f32.gmra.mrb[8].mxu0 %vm124_vm2, %v1163_v63 }
0x1066   :  { %3245 = vmatprep.mubr.msk.f32.mxu0 %vm124_vm2, %v1164_v0 }
0x1069   :  { %3246 = vmatmul.mubr.msk.f32.gmra.mrb[10].mxu0 %vm124_vm2, %v1165_v4 }
0x112c   :  { %v1013_v5 = vpop.f32.mrb[4].mxu0 }
0x112d   :  { %v1026_v9 = vadd.f32 %v1013_v5, %v3883_v36  ;;  %v3219_v10 = vpop.f32.mrb[5].mxu0  ;;  %v1019_v38 = vadd.f32 %v1018_v37, %v1013_v5 }
0x112f   :  { %1028 = vrot.lane.b32.xlu0 %v1026_v9, %s3670_s3  ;;  %v2922_v39 = vmul.f32 -1.442695, %v1019_v38  ;;  %v1473_v38 = vld [vmem:[%s4400_s10] sm:$0xff] }
0x1131   :  { %3575 = vpow2.f32 %v2922_v39  ;;  %v1474_v39 = vld [vmem:[%s4400_s10 + $0x8] sm:$0xff] }
0x1134   :  { %v3241_v18 = vpop.f32.mrb[6].mxu0 }
0x1135   :  { %v1275_v19 = vadd.f32 %v3241_v18, %v3984_v13  ;;  %v1269_v20 = vpop.f32.mrb[7].mxu0 }
0x1136   :  { %v1270_v21 = vadd.f32 %v3984_v13, %v1269_v20  ;;  %v1125_v20 = vld [vmem:[#allocation2 + $0x38] sm:$0xff] }
0x1137   :  { %v3988_v22 = vmax.f32 %v1275_v19, 0.0 }
0x1138   :  { %v3990_v23 = vmax.f32 %v1270_v21, 0.0  ;;  %v3244_v24 = vpop.f32.mrb[8].mxu0 }
0x1139   :  { %1318 = vst.msk [vmem:[%s4396_s16 + $0x8] sm:$0xff] %vm1316_vm5, %v3988_v22  ;;  %v1285_v25 = vadd.f32 %v3244_v24, %v3984_v13  ;;  %v1279_v26 = vpop.f32.mrb[9].mxu0 }
0x113a   :  { %1317 = vst.msk [vmem:[%s4396_s16] sm:$0xff] %vm1316_vm5, %v3990_v23  ;;  %v1280_v27 = vadd.f32 %v3984_v13, %v1279_v26 }
0x113b   :  { %v4004_v28 = vmax.f32 %v1285_v25, 0.0  ;;  %v3576_v40 = vpop.eup %3575 }
0x113c   :  { %v4006_v29 = vmax.f32 %v1280_v27, 0.0  ;;  %v3247_v30 = vpop.f32.mrb[10].mxu0  ;;  %v1023_v41 = vadd.f32 1.0, %v3576_v40 }
0x113d   :  { %1320 = vst.msk [vmem:[%s4396_s16 + $0x18] sm:$0xff] %vm1316_vm5, %v4004_v28  ;;  %v1295_v31 = vadd.f32 %v3247_v30, %v3984_v13  ;;  %v1289_v32 = vpop.f32.mrb[11].mxu0 }
0x113e   :  { %1319 = vst.msk [vmem:[%s4396_s16 + $0x10] sm:$0xff] %vm1316_vm5, %v4006_v29  ;;  %v1290_v33 = vadd.f32 %v3984_v13, %v1289_v32  ;;  %3577 = vrcp.f32 %v1023_v41  ;;  %v3465_v41 = vpack.c.bf16 %v1474_v39, %v1473_v38 }
0x113f   :  { %v4020_v34 = vmax.f32 %v1295_v31, 0.0 }
0x1140   :  { %v4022_v35 = vmax.f32 %v1290_v33, 0.0  ;;  %3466 = vmatprep.subr.bf16.mxu0 %v3465_v41 }
0x1141   :  { %1322 = vst.msk [vmem:[%s4396_s16 + $0x28] sm:$0xff] %vm1316_vm5, %v4020_v34  ;;  %3468 = vmatpush3.bf16.msra.mxu0 %v3465_v41 }
0x1142   :  { %1321 = vst.msk [vmem:[%s4396_s16 + $0x20] sm:$0xff] %vm1316_vm5, %v4022_v35 }
0x1148   :  { %v3578_v42 = vpop.eup %3577 }
0x1149   :  { %v1038_v49 = vsub.f32 1.0, %v3578_v42  ;;  %v1044_v51 = vmul.f32 %v3578_v42, %v3961_v55 }
0x11a1   :  { %v1029_v43 = vpop.permute.xlu0 %1028 }
0x11a2   :  { %v1031_v8 = vmul.f32 %v3578_v42, %v1029_v43 }
0x11a4   :  { %1033 = vrot.lane.b32.xlu1 %v1031_v8, %s3670_s3 }
0x1216   :  { %v1034_v44 = vpop.permute.xlu1 %1033 }
0x1217   :  { %v1036_v45 = vadd.f32 %v1034_v44, %v1018_v37 }
0x1219   :  { %3579 = vtanh.f32 %v1036_v45  ;;  %v1711_v45 = vld [vmem:[%s4401_s12] sm:$0xff] }
0x1223   :  { %v3580_v46 = vpop.eup %3579 }
0x1224   :  { %1040 = vrot.lane.b32.xlu0 %v3580_v46, %s3672_s30  ;;  %v1712_v46 = vld [vmem:[%s4401_s12 + $0x8] sm:$0xff] }
0x1225   :  { %v4116_v12 = vpack.c.bf16 %v1712_v46, %v1711_v45 }
0x1296   :  { %v1041_v50 = vpop.permute.xlu0 %1040 }
0x1297   :  { %v1043_v52 = vmul.f32 %v1041_v50, %v1038_v49  ;;  %v1713_v49 = vld [vmem:[%s4401_s12 + $0x10] sm:$0xff] }
0x1299   :  { %v4043_v53 = vadd.f32 %v1044_v51, %v1043_v52 }
0x129b   :  { %1047 = vrot.lane.b32.xlu1 %v4043_v53, %s3672_s30 }
0x130d   :  { %v1048_v54 = vpop.permute.xlu1 %1047 }
0x130e   :  { %1051 = vst.msk [vmem:[#allocation3 + $0x30] sm:$0xff] %vm124_vm2, %v1048_v54  ;;  %3229 = vmatmul.mubr.msk.f32.vlgmr.msra.gmra.mrb[16].mxu1 %vm124_vm2, %v1048_v54 }
0x130f   :  { %3464 = vmatpush3.bf16.msra.mxu1 %v3461_v48  ;;  %3255 = vmatprep.mubr.msk.f32.mxu1 %vm1316_vm5, %v3990_v23 }
0x1310   :  { %3469 = vmatprep.subr.bf16.mxu1 %v3667_v3 }
0x1312   :  { %3256 = vmatmul.mubr.msk.f32.vlgmr.msra.gmra.mrb[18].mxu1 %vm1316_vm5, %v3988_v22 }
0x1313   :  { %3258 = vmatprep.mubr.msk.f32.mxu1 %vm1316_vm5, %v4006_v29  ;;  %3471 = vmatpush3.bf16.msra.mxu1 %v4116_v12 }
0x1314   :  { %3472 = vmatprep.subr.bf16.mxu1 %v3667_v3 }
0x1315   :  { %v1166_v55 = vld [vmem:[#allocation3 + $0x30] sm:$0xff] }
0x1316   :  { %3248 = vmatprep.mubr.msk.f32.mxu0 %vm124_vm2, %v1166_v55  ;;  %3259 = vmatmul.mubr.msk.f32.gmra.mrb[20].mxu1 %vm1316_vm5, %v4004_v28 }
0x1317   :  { %3261 = vmatprep.mubr.msk.f32.mxu1 %vm1316_vm5, %v4022_v35 }
0x131a   :  { %3262 = vmatmul.mubr.msk.f32.gmra.mrb[22].mxu1 %vm1316_vm5, %v4020_v34 }
0x13e1   :  { %v1120_v56 = vpop.f32.mrb[16].mxu1 }
0x13e2   :  { %v1133_v57 = vadd.f32 %v1120_v56, %v3883_v36  ;;  %v3230_v58 = vpop.f32.mrb[17].mxu1  ;;  %v1126_v21 = vadd.f32 %v1125_v20, %v1120_v56 }
0x13e4   :  { %1135 = vrot.lane.b32.xlu0 %v1133_v57, %s3670_s3  ;;  %v2924_v24 = vmul.f32 -1.442695, %v1126_v21 }
0x13e5   :  { %v3257_v60 = vpop.f32.mrb[18].mxu1 }
0x13e6   :  { %v1430_v61 = vadd.f32 %v3257_v60, %v4067_v59  ;;  %v1424_v62 = vpop.f32.mrb[19].mxu1  ;;  %3581 = vpow2.f32 %v2924_v24 }
0x13e7   :  { %v1425_v63 = vadd.f32 %v4067_v59, %v1424_v62 }
0x13e8   :  { %1465 = vst.msk [vmem:[%s4399_s17 + $0x8] sm:$0xff] %vm1463_vm6, %v1430_v61 }
0x13e9   :  { %1464 = vst.msk [vmem:[%s4399_s17] sm:$0xff] %vm1463_vm6, %v1425_v63  ;;  %v3260_v36 = vpop.f32.mrb[20].mxu1 }
0x13ea   :  { %v1440_v0 = vadd.f32 %v3260_v36, %v4067_v59  ;;  %v1434_v4 = vpop.f32.mrb[21].mxu1 }
0x13eb   :  { %v1435_v5 = vadd.f32 %v4067_v59, %v1434_v4 }
0x13ec   :  { %1467 = vst.msk [vmem:[%s4399_s17 + $0x18] sm:$0xff] %vm1463_vm6, %v1440_v0 }
0x13ed   :  { %1466 = vst.msk [vmem:[%s4399_s17 + $0x10] sm:$0xff] %vm1463_vm6, %v1435_v5  ;;  %v3263_v9 = vpop.f32.mrb[22].mxu1 }
0x13ee   :  { %v1450_v10 = vadd.f32 %v3263_v9, %v4067_v59  ;;  %v1444_v18 = vpop.f32.mrb[23].mxu1 }
0x13ef   :  { %v1445_v19 = vadd.f32 %v4067_v59, %v1444_v18 }
0x13f0   :  { %1469 = vst.msk [vmem:[%s4399_s17 + $0x28] sm:$0xff] %vm1463_vm6, %v1450_v10  ;;  %v3582_v25 = vpop.eup %3581 }
0x13f1   :  { %1468 = vst.msk [vmem:[%s4399_s17 + $0x20] sm:$0xff] %vm1463_vm6, %v1445_v19  ;;  %v1130_v26 = vadd.f32 1.0, %v3582_v25 }
0x13f3   :  { %3583 = vrcp.f32 %v1130_v26 }
0x13fd   :  { %v3584_v27 = vpop.eup %3583 }
0x13fe   :  { %v1145_v40 = vsub.f32 1.0, %v3584_v27  ;;  %v1151_v43 = vmul.f32 %v3584_v27, %v4043_v53 }
0x1456   :  { %v1136_v30 = vpop.permute.xlu0 %1135 }
0x1457   :  { %v1138_v31 = vmul.f32 %v3584_v27, %v1136_v30 }
0x1459   :  { %1140 = vrot.lane.b32.xlu1 %v1138_v31, %s3670_s3 }
0x14cb   :  { %v1141_v32 = vpop.permute.xlu1 %1140 }
0x14cc   :  { %v1143_v33 = vadd.f32 %v1141_v32, %v1125_v20 }
0x14ce   :  { %3585 = vtanh.f32 %v1143_v33 }
0x14d8   :  { %v3586_v37 = vpop.eup %3585 }
0x14d9   :  { %1147 = vrot.lane.b32.xlu0 %v3586_v37, %s3672_s30 }
0x154b   :  { %v1148_v42 = vpop.permute.xlu0 %1147 }
0x154c   :  { %v1150_v8 = vmul.f32 %v1148_v42, %v1145_v40 }
0x154e   :  { %v1152_v44 = vadd.f32 %v1151_v43, %v1150_v8 }
0x1550   :  { %1154 = vrot.lane.b32.xlu1 %v1152_v44, %s3672_s30 }
0x15c2   :  { %v1155_v47 = vpop.permute.xlu1 %1154 }
0x15c3   :  { %1158 = vst.msk [vmem:[#allocation3 + $0x38] sm:$0xff] %vm124_vm2, %v1155_v47  ;;  %1159 = vst.msk [vmem:[#allocation4] sm:$0xff] %vm124_vm2, %v1155_v47 }
0x15ca   :  { %v1167_v48 = vld [vmem:[#allocation3 + $0x38] sm:$0xff] }
0x15cb   :  { %3249 = vmatmul.mubr.msk.f32.gmra.mrb[12].mxu0 %vm124_vm2, %v1167_v48 }
0x15cc   :  { %3271 = vmatprep.mubr.msk.f32.mxu0 %vm1316_vm5, %v3990_v23 }
0x15cf   :  { %3272 = vmatmul.mubr.msk.f32.vlgmr.msra.gmra.mrb[14].mxu0 %vm1316_vm5, %v3988_v22  ;;  %v1714_v22 = vld [vmem:[%s4401_s12 + $0x18] sm:$0xff] }
0x15d0   :  { %3274 = vmatprep.mubr.msk.f32.mxu0 %vm1316_vm5, %v4006_v29  ;;  %v4141_v23 = vpack.c.bf16 %v1714_v22, %v1713_v49  ;;  %v2961_v29 = vld [vmem:[%s4403_s13] ss:$0 sm:$0xff] }
0x15d1   :  { %1803 = vrot.lane.b32.xlu0 %v2961_v29, %s3670_s3 }
0x15d2   :  { %3474 = vmatpush3.bf16.msra.mxu1 %v4141_v23 }
0x15d3   :  { %3275 = vmatmul.mubr.msk.f32.gmra.mrb[16].mxu0 %vm1316_vm5, %v4004_v28  ;;  %v1472_v28 = vld [vmem:[%s4402_s9] sm:$0xf]  ;;  %3475 = vmatprep.subr.bf16.mxu1 %v3667_v3 }
0x15d4   :  { %3277 = vmatprep.mubr.msk.f32.mxu0 %vm1316_vm5, %v4022_v35  ;;  %3283 = vmatprep.subr.msk.mxu0 %vm168_vm0, %v1472_v28 }
0x15d5   :  { %3284 = vmatpush3.msk.msra.mxu0 %vm168_vm0, %v1472_v28 }
0x15d6   :  { %3493 = vmatprep.subr.bf16.mxu0 %v3667_v3 }
0x15d7   :  { %3278 = vmatmul.mubr.msk.f32.gmra.mrb[18].mxu0 %vm1316_vm5, %v4020_v34 }
0x169e   :  { %v3250_v34 = vpop.f32.mrb[12].mxu0 }
0x169f   :  { %v1305_v35 = vadd.f32 %v3250_v34, %v3984_v13  ;;  %v1299_v50 = vpop.f32.mrb[13].mxu0 }
0x16a0   :  { %v1300_v51 = vadd.f32 %v3984_v13, %v1299_v50  ;;  %v4173_v13 = vld [vmem:[#allocation5] sm:$0xff] }
0x16a1   :  { %v1315_v52 = vmax.f32 %v1305_v35, 0.0 }
0x16a2   :  { %v1314_v53 = vmax.f32 %v1300_v51, 0.0 }
0x16a3   :  { %1324 = vst.msk [vmem:[%s4396_s16 + $0x38] sm:$0xff] %vm1316_vm5, %v1315_v52 }
0x16a4   :  { %1323 = vst.msk [vmem:[%s4396_s16 + $0x30] sm:$0xff] %vm1316_vm5, %v1314_v53  ;;  %3264 = vmatprep.mubr.msk.f32.mxu1 %vm1316_vm5, %v1314_v53  ;;  %3280 = vmatprep.mubr.msk.f32.mxu0 %vm1316_vm5, %v1314_v53 }
0x16a5   :  { %3265 = vmatmul.mubr.msk.f32.gmra.mrb[24].mxu1 %vm1316_vm5, %v1315_v52  ;;  %3281 = vmatmul.mubr.msk.f32.gmra.mrb[20].mxu0 %vm1316_vm5, %v1315_v52 }
0x16a6   :  { %3285 = vmatprep.mubr.msk.f32.mxu0 %vm143_vm1, %v3774_v1  ;;  %3305 = vmatprep.mubr.msk.f32.mxu1 %vm3669_vm3, %v3668_v7 }
0x16a9   :  { %3286 = vmatmul.mubr.msk.f32.vlgmr.msra.gmra.mrb[14].mxu0 %vm143_vm1, %v3779_v2  ;;  %3306 = vmatmul.mubr.msk.f32.vlgmr.msra.gmra.mrb[26].mxu1 %vm124_vm2, %v4173_v13 }
0x16aa   :  { %3288 = vmatprep.mubr.msk.f32.mxu0 %vm143_vm1, %v3794_v6  ;;  %3477 = vmatpush3.bf16.msra.mxu1 %v4116_v12 }
0x16ab   :  { %3478 = vmatprep.subr.bf16.mxu1 %v3667_v3  ;;  %3316 = vmatprep.mubr.msk.f32.mxu1 %vm3669_vm3, %v3668_v7 }
0x16ac   :  { %3495 = vmatpush3.bf16.msra.mxu0 %v4116_v12 }
0x16ad   :  { %3289 = vmatmul.mubr.msk.f32.gmra.mrb[16].mxu0 %vm143_vm1, %v3820_v11  ;;  %3496 = vmatprep.subr.bf16.mxu0 %v3667_v3 }
0x16ae   :  { %3291 = vmatprep.mubr.msk.f32.mxu0 %vm143_vm1, %v3830_v14  ;;  %3480 = vmatpush3.bf16.msra.mxu1 %v4141_v23  ;;  %v4205_v14 = vpop.permute.xlu0 %1803 }
0x16af   :  { %3481 = vmatprep.subr.bf16.mxu1 %v3667_v3 }
0x16b0   :  { %3498 = vmatpush3.bf16.msra.mxu0 %v4141_v23 }
0x16b1   :  { %3292 = vmatmul.mubr.msk.f32.gmra.mrb[18].mxu0 %vm143_vm1, %v3843_v15  ;;  %3505 = vmatprep.subr.bf16.mxu0 %v3667_v3  ;;  %v2960_v15 = vld [vmem:[%s4404_s11] ss:$0 sm:$0xff] }
0x16b2   :  { %3294 = vmatprep.mubr.msk.f32.mxu0 %vm143_vm1, %v3849_v16 }
0x16b5   :  { %3295 = vmatmul.mubr.msk.f32.gmra.mrb[20].mxu0 %vm143_vm1, %v3861_v17 }
0x16b6   :  { %3349 = vmatprep.mubr.msk.f32.mxu0 %vm3669_vm3, %v3668_v7 }
0x1778   :  { %v3266_v1 = vpop.f32.mrb[24].mxu1 }
0x1779   :  { %v1460_v2 = vadd.f32 %v3266_v1, %v4067_v59  ;;  %v1454_v6 = vpop.f32.mrb[25].mxu1 }
0x177a   :  { %v1455_v11 = vadd.f32 %v4067_v59, %v1454_v6 }
0x177b   :  { %1471 = vst.msk [vmem:[%s4399_s17 + $0x38] sm:$0xff] %vm1463_vm6, %v1460_v2 }
0x177c   :  { %1470 = vst.msk [vmem:[%s4399_s17 + $0x30] sm:$0xff] %vm1463_vm6, %v1455_v11  ;;  %v3287_v16 = vpop.f32.mrb[14].mxu0  ;;  %v1791_v17 = vpop.f32.mrb[26].mxu1 }
0x177d   :  { %v1696_v54 = vadd.f32 %v3287_v16, %v2960_v15  ;;  %v1806_v55 = vadd.f32 %v4205_v14, %v1791_v17  ;;  %v1649_v56 = vpop.f32.mrb[15].mxu0  ;;  %v3307_v57 = vpop.f32.mrb[27].mxu1 }
0x177e   :  { %v1695_v58 = vadd.f32 %v2960_v15, %v1649_v56 }
0x177f   :  { %1704 = vst.msk [vmem:[#allocation2 + $0x8] sm:$0xff] %vm277_vm4, %v1696_v54  ;;  %1808 = vrot.lane.b32.xlu1 %v1806_v55, %s3670_s3 }
0x1780   :  { %1703 = vst.msk [vmem:[#allocation2] sm:$0xff] %vm277_vm4, %v1695_v58  ;;  %v3290_v59 = vpop.f32.mrb[16].mxu0 }
0x1781   :  { %v1698_v60 = vadd.f32 %v3290_v59, %v2960_v15  ;;  %v1659_v61 = vpop.f32.mrb[17].mxu0 }
0x1782   :  { %v1697_v62 = vadd.f32 %v2960_v15, %v1659_v61 }
0x1783   :  { %1706 = vst.msk [vmem:[#allocation2 + $0x18] sm:$0xff] %vm277_vm4, %v1698_v60 }
0x1784   :  { %1705 = vst.msk [vmem:[#allocation2 + $0x10] sm:$0xff] %vm277_vm4, %v1697_v62  ;;  %v3293_v63 = vpop.f32.mrb[18].mxu0 }
0x1785   :  { %v1700_v36 = vadd.f32 %v3293_v63, %v2960_v15  ;;  %v1669_v0 = vpop.f32.mrb[19].mxu0 }
0x1786   :  { %v1699_v4 = vadd.f32 %v2960_v15, %v1669_v0  ;;  %v1906_v46 = vld [vmem:[#allocation2 + $0x8] sm:$0xff] }
0x1787   :  { %1708 = vst.msk [vmem:[#allocation2 + $0x28] sm:$0xff] %vm277_vm4, %v1700_v36  ;;  %v1795_v19 = vld [vmem:[#allocation2] sm:$0xff] }
0x1788   :  { %1707 = vst.msk [vmem:[#allocation2 + $0x20] sm:$0xff] %vm277_vm4, %v1699_v4  ;;  %v3296_v5 = vpop.f32.mrb[20].mxu0  ;;  %v1796_v20 = vadd.f32 %v1795_v19, %v1791_v17 }
0x1789   :  { %v1702_v9 = vadd.f32 %v3296_v5, %v2960_v15  ;;  %v1679_v10 = vpop.f32.mrb[21].mxu0 }
0x178a   :  { %v1701_v18 = vadd.f32 %v2960_v15, %v1679_v10  ;;  %v2963_v21 = vmul.f32 -1.442695, %v1796_v20 }
0x178b   :  { %1710 = vst.msk [vmem:[#allocation2 + $0x38] sm:$0xff] %vm277_vm4, %v1702_v9  ;;  %v2011_v17 = vld [vmem:[#allocation2 + $0x10] sm:$0xff] }
0x178c   :  { %1709 = vst.msk [vmem:[#allocation2 + $0x30] sm:$0xff] %vm277_vm4, %v1701_v18  ;;  %3587 = vpow2.f32 %v2963_v21  ;;  %v2116_v21 = vld [vmem:[#allocation2 + $0x18] sm:$0xff] }
0x1796   :  { %v3588_v24 = vpop.eup %3587 }
0x1797   :  { %v1800_v25 = vadd.f32 1.0, %v3588_v24 }
0x1799   :  { %3589 = vrcp.f32 %v1800_v25 }
0x17a3   :  { %v3590_v26 = vpop.eup %3589 }
0x17a4   :  { %v1818_v38 = vsub.f32 1.0, %v3590_v26 }
0x17f1   :  { %v1809_v27 = vpop.permute.xlu1 %1808 }
0x17f2   :  { %v1811_v30 = vmul.f32 %v3590_v26, %v1809_v27 }
0x17f4   :  { %1813 = vrot.lane.b32.xlu0 %v1811_v30, %s3670_s3 }
0x17f8   :  { %1824 = vrot.lane.b32.xlu0 %v4173_v13, %s3671_s2 }
0x1866   :  { %v1814_v31 = vpop.permute.xlu0 %1813 }
0x1867   :  { %v1816_v32 = vadd.f32 %v1814_v31, %v1795_v19 }
0x1869   :  { %3591 = vtanh.f32 %v1816_v32 }
0x186a   :  { %v1825_v37 = vpop.permute.xlu0 %1824 }
0x186b   :  { %v1827_v40 = vmul.f32 %v3590_v26, %v1825_v37 }
0x1873   :  { %v3592_v33 = vpop.eup %3591 }
0x1874   :  { %1820 = vrot.lane.b32.xlu1 %v3592_v33, %s3672_s30 }
0x18e6   :  { %v1821_v39 = vpop.permute.xlu1 %1820 }
0x18e7   :  { %v1823_v41 = vmul.f32 %v1821_v39, %v1818_v38 }
0x18e9   :  { %v1828_v42 = vadd.f32 %v1827_v40, %v1823_v41 }
0x18eb   :  { %1830 = vrot.lane.b32.xlu1 %v1828_v42, %s3672_s30 }
0x195d   :  { %v1831_v43 = vpop.permute.xlu1 %1830 }
0x195e   :  { %1833 = vst.msk [vmem:[#allocation3] sm:$0xff] %vm124_vm2, %v1831_v43  ;;  %3317 = vmatmul.mubr.msk.f32.vlgmr.msra.gmra.mrb[28].mxu1 %vm124_vm2, %v1831_v43 }
0x195f   :  { %3483 = vmatpush3.bf16.msra.mxu1 %v4116_v12  ;;  %3327 = vmatprep.mubr.msk.f32.mxu1 %vm3669_vm3, %v3668_v7 }
0x1960   :  { %3484 = vmatprep.subr.bf16.mxu1 %v3667_v3 }
0x1963   :  { %3486 = vmatpush3.bf16.msra.mxu1 %v4141_v23 }
0x1964   :  { %3487 = vmatprep.subr.bf16.mxu1 %v3667_v3 }
0x1a31   :  { %v1902_v8 = vpop.f32.mrb[28].mxu1 }
0x1a32   :  { %v1914_v44 = vadd.f32 %v1902_v8, %v4205_v14  ;;  %v3318_v45 = vpop.f32.mrb[29].mxu1  ;;  %v1907_v47 = vadd.f32 %v1906_v46, %v1902_v8 }
0x1a34   :  { %1916 = vrot.lane.b32.xlu0 %v1914_v44, %s3670_s3  ;;  %v2965_v48 = vmul.f32 -1.442695, %v1907_v47  ;;  %v2221_v47 = vld [vmem:[#allocation2 + $0x20] sm:$0xff] }
0x1a36   :  { %3593 = vpow2.f32 %v2965_v48 }
0x1a40   :  { %v3594_v49 = vpop.eup %3593 }
0x1a41   :  { %v1911_v22 = vadd.f32 1.0, %v3594_v49 }
0x1a43   :  { %3595 = vrcp.f32 %v1911_v22 }
0x1a4d   :  { %v3596_v28 = vpop.eup %3595 }
0x1a4e   :  { %v1926_v52 = vsub.f32 1.0, %v3596_v28  ;;  %v1932_v13 = vmul.f32 %v3596_v28, %v1828_v42 }
0x1aa6   :  { %v1917_v29 = vpop.permute.xlu0 %1916 }
0x1aa7   :  { %v1919_v34 = vmul.f32 %v3596_v28, %v1917_v29 }
0x1aa9   :  { %1921 = vrot.lane.b32.xlu1 %v1919_v34, %s3670_s3 }
0x1b1b   :  { %v1922_v35 = vpop.permute.xlu1 %1921 }
0x1b1c   :  { %v1924_v50 = vadd.f32 %v1922_v35, %v1906_v46 }
0x1b1e   :  { %3597 = vtanh.f32 %v1924_v50 }
0x1b28   :  { %v3598_v51 = vpop.eup %3597 }
0x1b29   :  { %1928 = vrot.lane.b32.xlu0 %v3598_v51, %s3672_s30 }
0x1b9b   :  { %v1929_v53 = vpop.permute.xlu0 %1928 }
0x1b9c   :  { %v1931_v1 = vmul.f32 %v1929_v53, %v1926_v52 }
0x1b9e   :  { %v1933_v2 = vadd.f32 %v1932_v13, %v1931_v1 }
0x1ba0   :  { %1935 = vrot.lane.b32.xlu1 %v1933_v2, %s3672_s30 }
0x1c12   :  { %v1936_v6 = vpop.permute.xlu1 %1935 }
0x1c13   :  { %1938 = vst.msk [vmem:[#allocation3 + $0x8] sm:$0xff] %vm124_vm2, %v1936_v6  ;;  %3328 = vmatmul.mubr.msk.f32.vlgmr.msra.gmra.mrb[30].mxu1 %vm124_vm2, %v1936_v6 }
0x1c14   :  { %3489 = vmatpush3.bf16.msra.mxu1 %v4116_v12  ;;  %3338 = vmatprep.mubr.msk.f32.mxu1 %vm3669_vm3, %v3668_v7 }
0x1c15   :  { %3490 = vmatprep.subr.bf16.mxu1 %v3667_v3 }
0x1c18   :  { %3492 = vmatpush3.bf16.msra.mxu1 %v4141_v23 }
0x1c19   :  { %3499 = vmatprep.subr.bf16.mxu1 %v3667_v3 }
0x1ce6   :  { %v2007_v11 = vpop.f32.mrb[30].mxu1 }
0x1ce7   :  { %v2019_v15 = vadd.f32 %v2007_v11, %v4205_v14  ;;  %v3329_v16 = vpop.f32.mrb[31].mxu1  ;;  %v2012_v54 = vadd.f32 %v2011_v17, %v2007_v11 }
0x1ce9   :  { %2021 = vrot.lane.b32.xlu0 %v2019_v15, %s3670_s3  ;;  %v2967_v55 = vmul.f32 -1.442695, %v2012_v54  ;;  %v2326_v54 = vld [vmem:[#allocation2 + $0x28] sm:$0xff] }
0x1ceb   :  { %3599 = vpow2.f32 %v2967_v55 }
0x1cf5   :  { %v3600_v56 = vpop.eup %3599 }
0x1cf6   :  { %v2016_v57 = vadd.f32 1.0, %v3600_v56 }
0x1cf8   :  { %3601 = vrcp.f32 %v2016_v57 }
0x1d02   :  { %v3602_v58 = vpop.eup %3601 }
0x1d03   :  { %v2031_v36 = vsub.f32 1.0, %v3602_v58  ;;  %v2037_v4 = vmul.f32 %v3602_v58, %v1933_v2 }
0x1d5b   :  { %v2022_v59 = vpop.permute.xlu0 %2021 }
0x1d5c   :  { %v2024_v60 = vmul.f32 %v3602_v58, %v2022_v59 }
0x1d5e   :  { %2026 = vrot.lane.b32.xlu1 %v2024_v60, %s3670_s3  ;;  %v2578_v60 = vld [vmem:[%s4405_s14] sm:$0xff] }
0x1dd0   :  { %v2027_v61 = vpop.permute.xlu1 %2026 }
0x1dd1   :  { %v2029_v62 = vadd.f32 %v2027_v61, %v2011_v17  ;;  %v2579_v61 = vld [vmem:[%s4405_s14 + $0x8] sm:$0xff] }
0x1dd3   :  { %3603 = vtanh.f32 %v2029_v62  ;;  %v3517_v62 = vpack.c.bf16 %v2579_v61, %v2578_v60 }
0x1ddd   :  { %v3604_v63 = vpop.eup %3603 }
0x1dde   :  { %2033 = vrot.lane.b32.xlu0 %v3604_v63, %s3672_s30 }
0x1e50   :  { %v2034_v0 = vpop.permute.xlu0 %2033 }
0x1e51   :  { %v2036_v5 = vmul.f32 %v2034_v0, %v2031_v36 }
0x1e53   :  { %v2038_v9 = vadd.f32 %v2037_v4, %v2036_v5 }
0x1e55   :  { %2040 = vrot.lane.b32.xlu1 %v2038_v9, %s3672_s30 }
0x1ec7   :  { %v2041_v10 = vpop.permute.xlu1 %2040 }
0x1ec8   :  { %2043 = vst.msk [vmem:[#allocation3 + $0x10] sm:$0xff] %vm124_vm2, %v2041_v10  ;;  %3339 = vmatmul.mubr.msk.f32.vlgmr.msra.gmra.mrb[32].mxu1 %vm124_vm2, %v2041_v10  ;;  %v2580_v10 = vld [vmem:[%s4405_s14 + $0x10] sm:$0xff] }
0x1ec9   :  { %3501 = vmatpush3.bf16.msra.mxu1 %v4116_v12  ;;  %3360 = vmatprep.mubr.msk.f32.mxu1 %vm3669_vm3, %v3668_v7 }
0x1eca   :  { %3502 = vmatprep.subr.bf16.mxu1 %v3667_v3 }
0x1ecd   :  { %3504 = vmatpush3.bf16.msra.mxu1 %v4141_v23 }
0x1ece   :  { %3511 = vmatprep.subr.bf16.mxu1 %v3667_v3 }
0x1f9b   :  { %v2112_v18 = vpop.f32.mrb[32].mxu1 }
0x1f9c   :  { %v2124_v19 = vadd.f32 %v2112_v18, %v4205_v14  ;;  %v3340_v20 = vpop.f32.mrb[33].mxu1  ;;  %v2117_v24 = vadd.f32 %v2116_v21, %v2112_v18  ;;  %v2581_v18 = vld [vmem:[%s4405_s14 + $0x18] sm:$0xff] }
0x1f9e   :  { %2126 = vrot.lane.b32.xlu0 %v2124_v19, %s3670_s3  ;;  %v2969_v25 = vmul.f32 -1.442695, %v2117_v24  ;;  %v3521_v19 = vpack.c.bf16 %v2581_v18, %v2580_v10  ;;  %v2571_v24 = vld [vmem:[#allocation3 + $0x8] sm:$0xff] }
0x1fa0   :  { %3605 = vpow2.f32 %v2969_v25  ;;  %v2572_v25 = vld [vmem:[#allocation3 + $0x10] sm:$0xff] }
0x1faa   :  { %v3606_v26 = vpop.eup %3605 }
0x1fab   :  { %v2121_v27 = vadd.f32 1.0, %v3606_v26 }
0x1fad   :  { %3607 = vrcp.f32 %v2121_v27 }
0x1fb7   :  { %v3608_v30 = vpop.eup %3607 }
0x1fb8   :  { %v2136_v39 = vsub.f32 1.0, %v3608_v30  ;;  %v2142_v41 = vmul.f32 %v3608_v30, %v2038_v9 }
0x2010   :  { %v2127_v31 = vpop.permute.xlu0 %2126 }
0x2011   :  { %v2129_v32 = vmul.f32 %v3608_v30, %v2127_v31 }
0x2013   :  { %2131 = vrot.lane.b32.xlu1 %v2129_v32, %s3670_s3 }
0x2085   :  { %v2132_v33 = vpop.permute.xlu1 %2131 }
0x2086   :  { %v2134_v37 = vadd.f32 %v2132_v33, %v2116_v21  ;;  %v2570_v21 = vld [vmem:[#allocation3] sm:$0xff] }
0x2088   :  { %3609 = vtanh.f32 %v2134_v37 }
0x2092   :  { %v3610_v38 = vpop.eup %3609 }
0x2093   :  { %2138 = vrot.lane.b32.xlu0 %v3610_v38, %s3672_s30 }
0x2105   :  { %v2139_v40 = vpop.permute.xlu0 %2138 }
0x2106   :  { %v2141_v42 = vmul.f32 %v2139_v40, %v2136_v39 }
0x2108   :  { %v2143_v43 = vadd.f32 %v2142_v41, %v2141_v42 }
0x210a   :  { %2145 = vrot.lane.b32.xlu1 %v2143_v43, %s3672_s30 }
0x217c   :  { %v2146_v8 = vpop.permute.xlu1 %2145 }
0x217d   :  { %2148 = vst.msk [vmem:[#allocation3 + $0x18] sm:$0xff] %vm124_vm2, %v2146_v8  ;;  %3350 = vmatmul.mubr.msk.f32.vlgmr.msra.gmra.mrb[22].mxu0 %vm124_vm2, %v2146_v8 }
0x217e   :  { %3507 = vmatpush3.bf16.msra.mxu0 %v4116_v12  ;;  %3371 = vmatprep.mubr.msk.f32.mxu0 %vm3669_vm3, %v3668_v7 }
0x217f   :  { %3508 = vmatprep.subr.bf16.mxu0 %v3667_v3 }
0x2182   :  { %3510 = vmatpush3.bf16.msra.mxu0 %v4141_v23 }
0x2183   :  { %3518 = vmatprep.subr.bf16.mxu0 %v3517_v62 }
0x2184   :  { %v2573_v26 = vld [vmem:[#allocation3 + $0x18] sm:$0xff] }
0x2250   :  { %v2217_v44 = vpop.f32.mrb[22].mxu0 }
0x2251   :  { %v2229_v45 = vadd.f32 %v2217_v44, %v4205_v14  ;;  %v3351_v46 = vpop.f32.mrb[23].mxu0  ;;  %v2222_v48 = vadd.f32 %v2221_v47, %v2217_v44 }
0x2253   :  { %2231 = vrot.lane.b32.xlu0 %v2229_v45, %s3670_s3  ;;  %v2971_v49 = vmul.f32 -1.442695, %v2222_v48 }
0x2255   :  { %3611 = vpow2.f32 %v2971_v49 }
0x225f   :  { %v3612_v22 = vpop.eup %3611 }
0x2260   :  { %v2226_v28 = vadd.f32 1.0, %v3612_v22 }
0x2262   :  { %3613 = vrcp.f32 %v2226_v28 }
0x226c   :  { %v3614_v29 = vpop.eup %3613 }
0x226d   :  { %v2241_v53 = vsub.f32 1.0, %v3614_v29  ;;  %v2247_v1 = vmul.f32 %v3614_v29, %v2143_v43  ;;  %v2431_v43 = vld [vmem:[#allocation2 + $0x30] sm:$0xff] }
0x22c5   :  { %v2232_v34 = vpop.permute.xlu0 %2231 }
0x22c6   :  { %v2234_v35 = vmul.f32 %v3614_v29, %v2232_v34 }
0x22c8   :  { %2236 = vrot.lane.b32.xlu1 %v2234_v35, %s3670_s3 }
0x233a   :  { %v2237_v50 = vpop.permute.xlu1 %2236 }
0x233b   :  { %v2239_v51 = vadd.f32 %v2237_v50, %v2221_v47 }
0x233d   :  { %3615 = vtanh.f32 %v2239_v51 }
0x2347   :  { %v3616_v52 = vpop.eup %3615 }
0x2348   :  { %2243 = vrot.lane.b32.xlu0 %v3616_v52, %s3672_s30 }
0x23ba   :  { %v2244_v13 = vpop.permute.xlu0 %2243 }
0x23bb   :  { %v2246_v2 = vmul.f32 %v2244_v13, %v2241_v53 }
0x23bd   :  { %v2248_v6 = vadd.f32 %v2247_v1, %v2246_v2 }
0x23bf   :  { %2250 = vrot.lane.b32.xlu1 %v2248_v6, %s3672_s30 }
0x2431   :  { %v2251_v11 = vpop.permute.xlu1 %2250 }
0x2432   :  { %2253 = vst.msk [vmem:[#allocation3 + $0x20] sm:$0xff] %vm124_vm2, %v2251_v11  ;;  %3361 = vmatmul.mubr.msk.f32.vlgmr.msra.gmra.mrb[34].mxu1 %vm124_vm2, %v2251_v11  ;;  %v2536_v11 = vld [vmem:[#allocation2 + $0x38] sm:$0xff] }
0x2433   :  { %3513 = vmatpush3.bf16.msra.mxu1 %v4116_v12  ;;  %3382 = vmatprep.mubr.msk.f32.mxu1 %vm3669_vm3, %v3668_v7 }
0x2434   :  { %3514 = vmatprep.subr.bf16.mxu1 %v3667_v3 }
0x2437   :  { %3516 = vmatpush3.bf16.msra.mxu1 %v4141_v23 }
0x2439   :  { %v2574_v27 = vld [vmem:[#allocation3 + $0x20] sm:$0xff] }
0x2505   :  { %v2322_v15 = vpop.f32.mrb[34].mxu1 }
0x2506   :  { %v2334_v16 = vadd.f32 %v2322_v15, %v4205_v14  ;;  %v3362_v17 = vpop.f32.mrb[35].mxu1  ;;  %v2327_v55 = vadd.f32 %v2326_v54, %v2322_v15 }
0x2508   :  { %2336 = vrot.lane.b32.xlu0 %v2334_v16, %s3670_s3  ;;  %v2973_v56 = vmul.f32 -1.442695, %v2327_v55 }
0x250a   :  { %3617 = vpow2.f32 %v2973_v56 }
0x2514   :  { %v3618_v57 = vpop.eup %3617 }
0x2515   :  { %v2331_v58 = vadd.f32 1.0, %v3618_v57 }
0x2517   :  { %3619 = vrcp.f32 %v2331_v58 }
0x2521   :  { %v3620_v12 = vpop.eup %3619 }
0x2522   :  { %v2346_v36 = vsub.f32 1.0, %v3620_v12  ;;  %v2352_v4 = vmul.f32 %v3620_v12, %v2248_v6 }
0x257a   :  { %v2337_v59 = vpop.permute.xlu0 %2336 }
0x257b   :  { %v2339_v7 = vmul.f32 %v3620_v12, %v2337_v59 }
0x257d   :  { %2341 = vrot.lane.b32.xlu1 %v2339_v7, %s3670_s3 }
0x25ef   :  { %v2342_v3 = vpop.permute.xlu1 %2341 }
0x25f0   :  { %v2344_v23 = vadd.f32 %v2342_v3, %v2326_v54 }
0x25f2   :  { %3621 = vtanh.f32 %v2344_v23 }
0x25fc   :  { %v3622_v63 = vpop.eup %3621 }
0x25fd   :  { %2348 = vrot.lane.b32.xlu0 %v3622_v63, %s3672_s30 }
0x266f   :  { %v2349_v0 = vpop.permute.xlu0 %2348 }
0x2670   :  { %v2351_v5 = vmul.f32 %v2349_v0, %v2346_v36 }
0x2672   :  { %v2353_v9 = vadd.f32 %v2352_v4, %v2351_v5 }
0x2674   :  { %2355 = vrot.lane.b32.xlu1 %v2353_v9, %s3672_s30 }
0x26e6   :  { %v2356_v20 = vpop.permute.xlu1 %2355 }
0x26e7   :  { %2358 = vst.msk [vmem:[#allocation3 + $0x28] sm:$0xff] %vm124_vm2, %v2356_v20  ;;  %3372 = vmatmul.mubr.msk.f32.vlgmr.msra.gmra.mrb[24].mxu0 %vm124_vm2, %v2356_v20 }
0x26e8   :  { %3520 = vmatpush3.bf16.msra.mxu0 %v3517_v62  ;;  %3393 = vmatprep.mubr.msk.f32.mxu0 %vm124_vm2, %v2570_v21 }
0x26e9   :  { %3522 = vmatprep.subr.bf16.mxu0 %v3521_v19 }
0x26ec   :  { %3524 = vmatpush3.bf16.msra.mxu0 %v3521_v19 }
0x26ee   :  { %v2575_v30 = vld [vmem:[#allocation3 + $0x28] sm:$0xff] }
0x26ef   :  { %3394 = vmatmul.mubr.msk.f32.vlgmr.msra.gmra.mrb[26].mxu0 %vm124_vm2, %v2571_v24 }
0x26f0   :  { %3396 = vmatprep.mubr.msk.f32.mxu0 %vm124_vm2, %v2572_v25 }
0x26f3   :  { %3397 = vmatmul.mubr.msk.f32.gmra.mrb[28].mxu0 %vm124_vm2, %v2573_v26 }
0x26f4   :  { %3399 = vmatprep.mubr.msk.f32.mxu0 %vm124_vm2, %v2574_v27 }
0x26f7   :  { %3400 = vmatmul.mubr.msk.f32.gmra.mrb[30].mxu0 %vm124_vm2, %v2575_v30 }
0x27ba   :  { %v2427_v31 = vpop.f32.mrb[24].mxu0 }
0x27bb   :  { %v2439_v32 = vadd.f32 %v2427_v31, %v4205_v14  ;;  %v3373_v33 = vpop.f32.mrb[25].mxu0  ;;  %v2432_v8 = vadd.f32 %v2431_v43, %v2427_v31 }
0x27bd   :  { %2441 = vrot.lane.b32.xlu0 %v2439_v32, %s3670_s3  ;;  %v2975_v44 = vmul.f32 -1.442695, %v2432_v8 }
0x27bf   :  { %3623 = vpow2.f32 %v2975_v44 }
0x27c2   :  { %v4318_v37 = vpop.f32.mrb[26].mxu0 }
0x27c3   :  { %v2679_v38 = vpop.f32.mrb[27].mxu0 }
0x27c6   :  { %v3398_v39 = vpop.f32.mrb[28].mxu0 }
0x27c7   :  { %v2689_v40 = vpop.f32.mrb[29].mxu0 }
0x27c9   :  { %v3624_v45 = vpop.eup %3623 }
0x27ca   :  { %v3401_v41 = vpop.f32.mrb[30].mxu0  ;;  %v2436_v46 = vadd.f32 1.0, %v3624_v45 }
0x27cb   :  { %v4320_v42 = vpop.f32.mrb[31].mxu0 }
0x27cc   :  { %3625 = vrcp.f32 %v2436_v46 }
0x27d6   :  { %v3626_v47 = vpop.eup %3625 }
0x27d7   :  { %v2451_v34 = vsub.f32 1.0, %v3626_v47  ;;  %v2457_v50 = vmul.f32 %v3626_v47, %v2353_v9 }
0x282f   :  { %v2442_v48 = vpop.permute.xlu0 %2441 }
0x2830   :  { %v2444_v49 = vmul.f32 %v3626_v47, %v2442_v48 }
0x2832   :  { %2446 = vrot.lane.b32.xlu1 %v2444_v49, %s3670_s3 }
0x28a4   :  { %v2447_v22 = vpop.permute.xlu1 %2446 }
0x28a5   :  { %v2449_v28 = vadd.f32 %v2447_v22, %v2431_v43 }
0x28a7   :  { %3627 = vtanh.f32 %v2449_v28 }
0x28b1   :  { %v3628_v29 = vpop.eup %3627 }
0x28b2   :  { %2453 = vrot.lane.b32.xlu0 %v3628_v29, %s3672_s30 }
0x2924   :  { %v2454_v35 = vpop.permute.xlu0 %2453 }
0x2925   :  { %v2456_v51 = vmul.f32 %v2454_v35, %v2451_v34 }
0x2927   :  { %v2458_v52 = vadd.f32 %v2457_v50, %v2456_v51 }
0x2929   :  { %2460 = vrot.lane.b32.xlu1 %v2458_v52, %s3672_s30 }
0x299b   :  { %v2461_v53 = vpop.permute.xlu1 %2460 }
0x299c   :  { %2463 = vst.msk [vmem:[#allocation3 + $0x30] sm:$0xff] %vm124_vm2, %v2461_v53  ;;  %3383 = vmatmul.mubr.msk.f32.vlgmr.msra.gmra.mrb[36].mxu1 %vm124_vm2, %v2461_v53 }
0x29a3   :  { %v2576_v13 = vld [vmem:[#allocation3 + $0x30] sm:$0xff] }
0x29a4   :  { %3402 = vmatprep.mubr.msk.f32.mxu0 %vm124_vm2, %v2576_v13 }
0x2a6f   :  { %v2532_v1 = vpop.f32.mrb[36].mxu1 }
0x2a70   :  { %v2544_v2 = vadd.f32 %v2532_v1, %v4205_v14  ;;  %v3384_v6 = vpop.f32.mrb[37].mxu1  ;;  %v2537_v15 = vadd.f32 %v2536_v11, %v2532_v1  ;;  %v2978_v14 = vld [vmem:[%s4406_s15] ss:$0 sm:$0xff] }
0x2a71   :  { %v2680_v7 = vadd.f32 %v2978_v14, %v2679_v38  ;;  %v2690_v3 = vadd.f32 %v2978_v14, %v2689_v40  ;;  %v2695_v60 = vadd.f32 %v3398_v39, %v2978_v14  ;;  %v2705_v62 = vadd.f32 %v3401_v41, %v2978_v14 }
0x2a72   :  { %2546 = vrot.lane.b32.xlu0 %v2544_v2, %s3670_s3  ;;  %v2977_v16 = vmul.f32 -1.442695, %v2537_v15  ;;  %v2685_v18 = vadd.f32 %v4318_v37, %v2978_v14  ;;  %v2700_v19 = vadd.f32 %v2978_v14, %v4320_v42 }
0x2a73   :  { %v2718_v23 = vsel %vm143_vm1, %v2680_v7, -inf  ;;  %v2724_v61 = vsel %vm143_vm1, %v2690_v3, -inf  ;;  %v2727_v63 = vsel %vm143_vm1, %v2695_v60, -inf  ;;  %v2733_v36 = vsel %vm143_vm1, %v2705_v62, -inf }
0x2a74   :  { %3629 = vpow2.f32 %v2977_v16  ;;  %v2721_v20 = vsel %vm143_vm1, %v2685_v18, -inf  ;;  %v2730_v21 = vsel %vm143_vm1, %v2700_v19, -inf }
0x2a7e   :  { %v3630_v17 = vpop.eup %3629 }
0x2a7f   :  { %v2541_v54 = vadd.f32 1.0, %v3630_v17 }
0x2a81   :  { %3631 = vrcp.f32 %v2541_v54 }
0x2a8b   :  { %v3632_v55 = vpop.eup %3631 }
0x2a8c   :  { %v2556_v0 = vsub.f32 1.0, %v3632_v55  ;;  %v2562_v5 = vmul.f32 %v3632_v55, %v2458_v52 }
0x2ae4   :  { %v2547_v56 = vpop.permute.xlu0 %2546 }
0x2ae5   :  { %v2549_v57 = vmul.f32 %v3632_v55, %v2547_v56 }
0x2ae7   :  { %2551 = vrot.lane.b32.xlu1 %v2549_v57, %s3670_s3 }
0x2b59   :  { %v2552_v58 = vpop.permute.xlu1 %2551 }
0x2b5a   :  { %v2554_v12 = vadd.f32 %v2552_v58, %v2536_v11 }
0x2b5c   :  { %3633 = vtanh.f32 %v2554_v12 }
0x2b66   :  { %v3634_v59 = vpop.eup %3633 }
0x2b67   :  { %2558 = vrot.lane.b32.xlu0 %v3634_v59, %s3672_s30 }
0x2b86   :  { %2719 = vmax.xlane.f32.xlu0 %v2718_v23 }
0x2b8a   :  { %2725 = vmax.xlane.f32.xlu0 %v2724_v61 }
0x2b8e   :  { %2728 = vmax.xlane.f32.xlu0 %v2727_v63 }
0x2b92   :  { %2734 = vmax.xlane.f32.xlu0 %v2733_v36 }
0x2bd9   :  { %v2559_v4 = vpop.permute.xlu0 %2558 }
0x2bda   :  { %v2561_v9 = vmul.f32 %v2559_v4, %v2556_v0 }
0x2bdc   :  { %v2563_v10 = vadd.f32 %v2562_v5, %v2561_v9 }
0x2bde   :  { %2565 = vrot.lane.b32.xlu1 %v2563_v10, %s3672_s30 }
0x2c02   :  { %2722 = vmax.xlane.f32.xlu1 %v2721_v20 }
0x2c06   :  { %2731 = vmax.xlane.f32.xlu1 %v2730_v21 }
0x2c13   :  { %v2720_v26 = vpop.xlane.xlu0 %2719 }
0x2c14   :  { %v2742_v33 = vsub.f32 %v2680_v7, %v2720_v26 }
0x2c16   :  { %v2750_v39 = vmul.f32 1.442695, %v2742_v33 }
0x2c17   :  { %v2726_v27 = vpop.xlane.xlu0 %2725 }
0x2c18   :  { %v2744_v40 = vsub.f32 %v2690_v3, %v2726_v27 }
0x2c1a   :  { %v2754_v44 = vmul.f32 1.442695, %v2744_v40 }
0x2c1b   :  { %v2729_v31 = vpop.xlane.xlu0 %2728 }
0x2c1c   :  { %v2745_v37 = vsub.f32 %v2695_v60, %v2729_v31 }
0x2c1e   :  { %v2756_v43 = vmul.f32 1.442695, %v2745_v37 }
0x2c1f   :  { %v2735_v41 = vpop.xlane.xlu0 %2734 }
0x2c20   :  { %v2747_v8 = vsub.f32 %v2705_v62, %v2735_v41 }
0x2c22   :  { %v2760_v46 = vmul.f32 1.442695, %v2747_v8 }
0x2c50   :  { %v2566_v24 = vpop.permute.xlu1 %2565 }
0x2c51   :  { %2568 = vst.msk [vmem:[#allocation3 + $0x38] sm:$0xff] %vm124_vm2, %v2566_v24  ;;  %2569 = vst.msk [vmem:[#allocation5] sm:$0xff] %vm124_vm2, %v2566_v24 }
0x2c58   :  { %v2577_v25 = vld [vmem:[#allocation3 + $0x38] sm:$0xff] }
0x2c59   :  { %3403 = vmatmul.mubr.msk.f32.gmra.mrb[32].mxu0 %vm124_vm2, %v2577_v25 }
0x2c8f   :  { %v2723_v30 = vpop.xlane.xlu1 %2722 }
0x2c90   :  { %v2743_v32 = vsub.f32 %v2685_v18, %v2723_v30 }
0x2c92   :  { %v2752_v38 = vmul.f32 1.442695, %v2743_v32 }
0x2c93   :  { %v2732_v42 = vpop.xlane.xlu1 %2731 }
0x2c94   :  { %3635 = vpow2.f32 %v2752_v38  ;;  %v2746_v45 = vsub.f32 %v2700_v19, %v2732_v42 }
0x2c95   :  { %3637 = vpow2.f32 %v2750_v39 }
0x2c96   :  { %3639 = vpow2.f32 %v2756_v43  ;;  %v2758_v47 = vmul.f32 1.442695, %v2746_v45 }
0x2c97   :  { %3641 = vpow2.f32 %v2754_v44 }
0x2c98   :  { %3643 = vpow2.f32 %v2760_v46 }
0x2c99   :  { %3645 = vpow2.f32 %v2758_v47 }
0x2c9e   :  { %v3636_v34 = vpop.eup %3635 }
0x2c9f   :  { %v3638_v50 = vpop.eup %3637  ;;  %v2769_v51 = vsel %vm143_vm1, %v3636_v34, 0.0 }
0x2ca0   :  { %v3640_v52 = vpop.eup %3639  ;;  %v2766_v53 = vsel %vm143_vm1, %v3638_v50, 0.0 }
0x2ca1   :  { %v3642_v13 = vpop.eup %3641  ;;  %v2775_v1 = vsel %vm143_vm1, %v3640_v52, 0.0 }
0x2ca2   :  { %v3644_v2 = vpop.eup %3643  ;;  %v2772_v6 = vsel %vm143_vm1, %v3642_v13, 0.0 }
0x2ca3   :  { %v3646_v11 = vpop.eup %3645  ;;  %v2781_v15 = vsel %vm143_vm1, %v3644_v2, 0.0 }
0x2ca4   :  { %v2778_v16 = vsel %vm143_vm1, %v3646_v11, 0.0 }
0x2d2c   :  { %v3404_v48 = vpop.f32.mrb[32].mxu0 }
0x2d2d   :  { %v2715_v49 = vadd.f32 %v3404_v48, %v2978_v14  ;;  %v2709_v22 = vpop.f32.mrb[33].mxu0 }
0x2d2e   :  { %v2710_v28 = vadd.f32 %v2978_v14, %v2709_v22 }
0x2d2f   :  { %v2739_v29 = vsel %vm143_vm1, %v2715_v49, -inf }
0x2d30   :  { %2740 = vmax.xlane.f32.xlu0 %v2739_v29  ;;  %v2736_v35 = vsel %vm143_vm1, %v2710_v28, -inf }
0x2d31   :  { %2737 = vmax.xlane.f32.xlu1 %v2736_v35 }
0x2d34   :  { %2770 = vadd.xlane.f32.xlu0 %v2769_v51 }
0x2d35   :  { %2767 = vadd.xlane.f32.xlu1 %v2766_v53 }
0x2d38   :  { %2776 = vadd.xlane.f32.xlu0 %v2775_v1 }
0x2d39   :  { %2773 = vadd.xlane.f32.xlu1 %v2772_v6 }
0x2d3c   :  { %2782 = vadd.xlane.f32.xlu0 %v2781_v15 }
0x2d3d   :  { %2779 = vadd.xlane.f32.xlu1 %v2778_v16 }
0x2dbd   :  { %v2741_v17 = vpop.xlane.xlu0 %2740 }
0x2dbe   :  { %v2749_v54 = vsub.f32 %v2715_v49, %v2741_v17  ;;  %v2738_v55 = vpop.xlane.xlu1 %2737 }
0x2dbf   :  { %v2748_v56 = vsub.f32 %v2710_v28, %v2738_v55 }
0x2dc0   :  { %v2764_v57 = vmul.f32 1.442695, %v2749_v54 }
0x2dc1   :  { %v2762_v58 = vmul.f32 1.442695, %v2748_v56  ;;  %v2771_v12 = vpop.xlane.xlu0 %2770 }
0x2dc2   :  { %3647 = vpow2.f32 %v2764_v57  ;;  %v2768_v59 = vpop.xlane.xlu1 %2767 }
0x2dc3   :  { %3649 = vpow2.f32 %v2762_v58 }
0x2dc4   :  { %3651 = vrcp.f32 %v2771_v12 }
0x2dc5   :  { %3653 = vrcp.f32 %v2768_v59  ;;  %v2777_v14 = vpop.xlane.xlu0 %2776 }
0x2dc6   :  { %3655 = vrcp.f32 %v2777_v14  ;;  %v2774_v7 = vpop.xlane.xlu1 %2773 }
0x2dc7   :  { %3657 = vrcp.f32 %v2774_v7 }
0x2dc9   :  { %v2783_v3 = vpop.xlane.xlu0 %2782 }
0x2dca   :  { %3659 = vrcp.f32 %v2783_v3  ;;  %v2780_v23 = vpop.xlane.xlu1 %2779 }
0x2dcb   :  { %3661 = vrcp.f32 %v2780_v23 }
0x2dcc   :  { %v3648_v60 = vpop.eup %3647 }
0x2dcd   :  { %v3650_v61 = vpop.eup %3649  ;;  %v2787_v62 = vsel %vm143_vm1, %v3648_v60, 0.0 }
0x2dce   :  { %v3652_v63 = vpop.eup %3651  ;;  %2788 = vadd.xlane.f32.xlu0 %v2787_v62  ;;  %v2784_v36 = vsel %vm143_vm1, %v3650_v61, 0.0 }
0x2dcf   :  { %v3654_v0 = vpop.eup %3653  ;;  %v2793_v4 = vmul.f32 %v3652_v63, %v3636_v34  ;;  %2785 = vadd.xlane.f32.xlu1 %v2784_v36 }
0x2dd0   :  { %v3656_v5 = vpop.eup %3655  ;;  %v2791_v9 = vmul.f32 %v3654_v0, %v3638_v50 }
0x2dd1   :  { %v3658_v10 = vpop.eup %3657  ;;  %2807 = vst.msk [vmem:[%s4407_s18 + $0x8] sm:$0xff] %vm143_vm1, %v2793_v4  ;;  %v2797_v18 = vmul.f32 %v3656_v5, %v3640_v52 }
0x2dd2   :  { %2806 = vst.msk [vmem:[%s4407_s18] sm:$0xff] %vm143_vm1, %v2791_v9  ;;  %v2795_v19 = vmul.f32 %v3658_v10, %v3642_v13 }
0x2dd3   :  { %2809 = vst.msk [vmem:[%s4407_s18 + $0x18] sm:$0xff] %vm143_vm1, %v2797_v18 }
0x2dd4   :  { %v3660_v20 = vpop.eup %3659  ;;  %2808 = vst.msk [vmem:[%s4407_s18 + $0x10] sm:$0xff] %vm143_vm1, %v2795_v19 }
0x2dd5   :  { %v3662_v21 = vpop.eup %3661  ;;  %v2801_v24 = vmul.f32 %v3660_v20, %v3644_v2 }
0x2dd6   :  { %v2799_v25 = vmul.f32 %v3662_v21, %v3646_v11 }
0x2dd7   :  { %2811 = vst.msk [vmem:[%s4407_s18 + $0x28] sm:$0xff] %vm143_vm1, %v2801_v24 }
0x2dd8   :  { %2810 = vst.msk [vmem:[%s4407_s18 + $0x20] sm:$0xff] %vm143_vm1, %v2799_v25 }
0x2e5b   :  { %v2789_v26 = vpop.xlane.xlu0 %2788 }
0x2e5c   :  { %3663 = vrcp.f32 %v2789_v26  ;;  %v2786_v27 = vpop.xlane.xlu1 %2785 }
0x2e5d   :  { %3665 = vrcp.f32 %v2786_v27 }
0x2e66   :  { %v3664_v30 = vpop.eup %3663 }
0x2e67   :  { %v3666_v31 = vpop.eup %3665  ;;  %v2805_v32 = vmul.f32 %v3664_v30, %v3648_v60 }
0x2e68   :  { %v2803_v33 = vmul.f32 %v3666_v31, %v3650_v61 }
0x2e69   :  { %2813 = vst.msk [vmem:[%s4407_s18 + $0x38] sm:$0xff] %vm143_vm1, %v2805_v32 }
0x2e6a   :  { %2812 = vst.msk [vmem:[%s4407_s18 + $0x30] sm:$0xff] %vm143_vm1, %v2803_v33 }

</bundles_post_ra>
